<compile_context>
chip_gen: v7x
topology: tpu7x:2x2x1
jax: 0.10.0
libtpu: 0.0.40
codegen_flags: <defaults>
</compile_context>

<pallas_src>
import math

import jax
import jax.numpy as jnp
from jax import lax
from jax.experimental import pallas as pl
from jax.experimental.pallas import tpu as pltpu


def transformer_block_kernel(x_ref,
                             ln1_g_ref, ln1_b_ref,
                             wq_ref, wk_ref, wv_ref,
                             wo_ref, bo_ref,
                             ln2_g_ref, ln2_b_ref,
                             w1_ref, b1_ref,
                             w2_ref, b2_ref,
                             o_ref):
    S, D = x_ref.shape[1], x_ref.shape[2]
    H = wq_ref.shape[0]                                   # heads = leading weight dim
    x = x_ref[0].astype(jnp.float32)                      # (S, D) residual kept in f32

    def layernorm(v, g, b):                               # matches nn.LayerNorm (eps=1e-5)
        mu = jnp.mean(v, axis=-1, keepdims=True)
        var = jnp.mean((v - mu) ** 2, axis=-1, keepdims=True)
        return (v - mu) * lax.rsqrt(var + 1e-5) * g + b

    # ---------------- attention branch ----------------
    xn1 = layernorm(x, ln1_g_ref[0], ln1_b_ref[0])
    # Heads are a leading batch dim of the (host-reshaped) weights, so all head
    # math is batched matmuls: no unaligned lane slices, no concatenate.
    xn1_h = jnp.broadcast_to(xn1.astype(jnp.bfloat16), (H, S, D))
    q = jnp.einsum('hsd,hde->hse', xn1_h, wq_ref[...],
                   preferred_element_type=jnp.float32)    # (H, S, hd); scale folded into W_Q
    k = jnp.einsum('hsd,hde->hse', xn1_h, wk_ref[...],
                   preferred_element_type=jnp.float32)
    v = jnp.einsum('hsd,hde->hse', xn1_h, wv_ref[...],
                   preferred_element_type=jnp.float32)

    row = lax.broadcasted_iota(jnp.int32, (H, S, S), 1)
    col = lax.broadcasted_iota(jnp.int32, (H, S, S), 2)
    causal = col > row                                    # == triu(ones, diagonal=1)

    s = jnp.einsum('hqe,hke->hqk', q.astype(jnp.bfloat16), k.astype(jnp.bfloat16),
                   preferred_element_type=jnp.float32)    # (H, S, S) scores in f32
    s = jnp.where(causal, -1e30, s)                       # finite mask: no inf-inf NaN traps
    s = s - jnp.max(s, axis=-1, keepdims=True)
    p = jnp.exp(s)
    p = p * pl.reciprocal(jnp.sum(p, axis=-1, keepdims=True), approx=True)
    # TODO(synk): nn.Dropout is identity here (inference semantics / p inactive in eval).
    ctx = jnp.einsum('hqk,hke->hqe', p.astype(jnp.bfloat16), v.astype(jnp.bfloat16),
                     preferred_element_type=jnp.float32)  # (H, S, hd)
    # Per-head output projection with (H, hd, D) weights, summed over heads
    # == concat(heads) @ W_O, but without any relayout.
    attn = jnp.sum(
        jnp.einsum('hse,hef->hsf', ctx.astype(jnp.bfloat16), wo_ref[...],
                   preferred_element_type=jnp.float32),
        axis=0) + bo_ref[0]
    x1 = x + attn

    # ---------------- feed-forward branch ----------------
    xn2 = layernorm(x1, ln2_g_ref[0], ln2_b_ref[0])
    h1 = jnp.dot(xn2.astype(jnp.bfloat16), w1_ref[...],
                 preferred_element_type=jnp.float32) + b1_ref[0]
    h1 = 0.5 * h1 * (1.0 + lax.erf(h1 / math.sqrt(2.0)))  # exact GELU (nn.GELU default)
    ff = jnp.dot(h1.astype(jnp.bfloat16), w2_ref[...],
                 preferred_element_type=jnp.float32) + b2_ref[0]

    o_ref[0] = (x1 + ff).astype(o_ref.dtype)


def transformer_block(x, params, num_heads):
    """params: (g1, b1, wq, wk, wv, wo, bo, g2, b2, w1, bf1, w2, bf2) with linear
    weights pre-transposed to (in, out) and biases/LN params shaped (1, out)."""
    B, S, D = x.shape
    H = num_heads
    hd = D // H
    (g1, b1, wq, wk, wv, wo, bo, g2, b2, w1, bf1, w2, bf2) = params

    f32, bf16 = jnp.float32, jnp.bfloat16
    scale = 1.0 / math.sqrt(hd)
    # Host-side (free) head split + bf16 cast; fold the softmax scale into W_Q.
    wq_h = (wq * scale).reshape(D, H, hd).transpose(1, 0, 2).astype(bf16)  # (H, D, hd)
    wk_h = wk.reshape(D, H, hd).transpose(1, 0, 2).astype(bf16)            # (H, D, hd)
    wv_h = wv.reshape(D, H, hd).transpose(1, 0, 2).astype(bf16)            # (H, D, hd)
    wo_h = wo.reshape(H, hd, D).astype(bf16)                               # (H, hd, D)

    kernel_params = (g1.astype(f32), b1.astype(f32),
                     wq_h, wk_h, wv_h, wo_h, bo.astype(f32),
                     g2.astype(f32), b2.astype(f32),
                     w1.astype(bf16), bf1.astype(f32),
                     w2.astype(bf16), bf2.astype(f32))

    def full_spec(shape):
        n = len(shape)
        return pl.BlockSpec(shape, lambda b, _n=n: (0,) * _n)  # grid-invariant weights

    return pl.pallas_call(
        transformer_block_kernel,
        out_shape=jax.ShapeDtypeStruct((B, S, D), x.dtype),
        grid_spec=pltpu.PrefetchScalarGridSpec(
            num_scalar_prefetch=0,
            grid=(B,),
            in_specs=[pl.BlockSpec((1, S, D), lambda b: (b, 0, 0))]
                     + [full_spec(p.shape) for p in kernel_params],
            out_specs=pl.BlockSpec((1, S, D), lambda b: (b, 0, 0)),
        ),
        compiler_params=pltpu.CompilerParams(
            dimension_semantics=("parallel",),
            vmem_limit_bytes=64 * 1024 * 1024,   # explicit budget (fits v7x's 64 MiB)
        ),
    )(x, *kernel_params)


# ------------------------- pure-JAX reference -------------------------
def reference(x, params, num_heads):
    (g1, b1, wq, wk, wv, wo, bo, g2, b2, w1, bf1, w2, bf2) = params
    B, S, D = x.shape
    hd = D // num_heads

    def ln(v, g, b):
        mu = jnp.mean(v, -1, keepdims=True)
        var = jnp.mean((v - mu) ** 2, -1, keepdims=True)
        return (v - mu) / jnp.sqrt(var + 1e-5) * g[0] + b[0]

    xn = ln(x, g1, b1)
    q = (xn @ wq).reshape(B, S, num_heads, hd).transpose(0, 2, 1, 3)
    k = (xn @ wk).reshape(B, S, num_heads, hd).transpose(0, 2, 1, 3)
    v = (xn @ wv).reshape(B, S, num_heads, hd).transpose(0, 2, 1, 3)
    s = q @ jnp.swapaxes(k, -2, -1) / math.sqrt(hd)
    mask = jnp.triu(jnp.ones((S, S), bool), k=1)
    s = jnp.where(mask, -jnp.inf, s)
    w = jax.nn.softmax(s, axis=-1)
    o = (w @ v).transpose(0, 2, 1, 3).reshape(B, S, D)
    x1 = x + (o @ wo + bo[0])
    xn2 = ln(x1, g2, b2)
    h = xn2 @ w1 + bf1[0]
    h = 0.5 * h * (1.0 + lax.erf(h / math.sqrt(2.0)))
    return x1 + (h @ w2 + bf2[0])


if __name__ == "__main__":
    # cfg: emb_dim=32, context_length=8, n_heads=4, drop_rate=0.0, qkv_bias=False
    B, S, D, H = 2, 8, 32, 4
    DFF = 4 * D

    key = jax.random.PRNGKey(0)
    keys = jax.random.split(key, 10)
    std = 0.02
    # All linear weights stored pre-transposed as (in, out); biases as (1, out).
    wq = std * jax.random.normal(keys[0], (D, D), jnp.float32)
    wk = std * jax.random.normal(keys[1], (D, D), jnp.float32)
    wv = std * jax.random.normal(keys[2], (D, D), jnp.float32)
    wo = std * jax.random.normal(keys[3], (D, D), jnp.float32)
    bo = std * jax.random.normal(keys[4], (1, D), jnp.float32)
    w1 = std * jax.random.normal(keys[5], (D, DFF), jnp.float32)
    bf1 = std * jax.random.normal(keys[6], (1, DFF), jnp.float32)
    w2 = std * jax.random.normal(keys[7], (DFF, D), jnp.float32)
    bf2 = std * jax.random.normal(keys[8], (1, D), jnp.float32)
    g1 = jnp.ones((1, D), jnp.float32)
    b1 = jnp.zeros((1, D), jnp.float32)
    g2 = jnp.ones((1, D), jnp.float32)
    b2 = jnp.zeros((1, D), jnp.float32)

    params = (g1, b1, wq, wk, wv, wo, bo, g2, b2, w1, bf1, w2, bf2)

    x = jax.random.normal(keys[9], (B, S, D), jnp.float32)

    out = transformer_block(x, params, num_heads=H)
    out = jax.block_until_ready(out)

    ref = reference(x, params, num_heads=H)
    assert out.shape == (B, S, D)
    # bf16 MXU inputs (f32 accumulation) vs. the f32 reference => bf16-level tolerance.
    assert jnp.allclose(out, ref, atol=2e-2, rtol=2e-2), "mismatch vs reference"
    print("KERNEL_OK")
</pallas_src>

<mosaic_0001>
module attributes {stable_mosaic.version = 11 : i64} {
  func.func @transformer_block_kernel(%arg0: i32, %arg1: memref<1x8x32xf32, #tpu.memory_space<vmem>>, %arg2: memref<1x32xf32, #tpu.memory_space<vmem>>, %arg3: memref<1x32xf32, #tpu.memory_space<vmem>>, %arg4: memref<4x32x8xbf16, #tpu.memory_space<vmem>>, %arg5: memref<4x32x8xbf16, #tpu.memory_space<vmem>>, %arg6: memref<4x32x8xbf16, #tpu.memory_space<vmem>>, %arg7: memref<4x8x32xbf16, #tpu.memory_space<vmem>>, %arg8: memref<1x32xf32, #tpu.memory_space<vmem>>, %arg9: memref<1x32xf32, #tpu.memory_space<vmem>>, %arg10: memref<1x32xf32, #tpu.memory_space<vmem>>, %arg11: memref<32x128xbf16, #tpu.memory_space<vmem>>, %arg12: memref<1x128xf32, #tpu.memory_space<vmem>>, %arg13: memref<128x32xbf16, #tpu.memory_space<vmem>>, %arg14: memref<1x32xf32, #tpu.memory_space<vmem>>, %arg15: memref<1x8x32xf32, #tpu.memory_space<vmem>>) attributes {dimension_semantics = [#tpu.dimension_semantics<parallel>], iteration_bounds = array<i64: 2>, scalar_prefetch = 0 : i64, scratch_operands = 0 : i64, tpu.core_type = #tpu.core_type<tc>, window_params = [{transform_indices = @transform_0, window_bounds = array<i64: 1, 8, 32>}, {pipeline_mode = #tpu.pipeline_mode<synchronous>, transform_indices = @transform_1, window_bounds = array<i64: 1, 32>}, {pipeline_mode = #tpu.pipeline_mode<synchronous>, transform_indices = @transform_2, window_bounds = array<i64: 1, 32>}, {pipeline_mode = #tpu.pipeline_mode<synchronous>, transform_indices = @transform_3, window_bounds = array<i64: 4, 32, 8>}, {pipeline_mode = #tpu.pipeline_mode<synchronous>, transform_indices = @transform_4, window_bounds = array<i64: 4, 32, 8>}, {pipeline_mode = #tpu.pipeline_mode<synchronous>, transform_indices = @transform_5, window_bounds = array<i64: 4, 32, 8>}, {pipeline_mode = #tpu.pipeline_mode<synchronous>, transform_indices = @transform_6, window_bounds = array<i64: 4, 8, 32>}, {pipeline_mode = #tpu.pipeline_mode<synchronous>, transform_indices = @transform_7, window_bounds = array<i64: 1, 32>}, {pipeline_mode = #tpu.pipeline_mode<synchronous>, transform_indices = @transform_8, window_bounds = array<i64: 1, 32>}, {pipeline_mode = #tpu.pipeline_mode<synchronous>, transform_indices = @transform_9, window_bounds = array<i64: 1, 32>}, {pipeline_mode = #tpu.pipeline_mode<synchronous>, transform_indices = @transform_10, window_bounds = array<i64: 32, 128>}, {pipeline_mode = #tpu.pipeline_mode<synchronous>, transform_indices = @transform_11, window_bounds = array<i64: 1, 128>}, {pipeline_mode = #tpu.pipeline_mode<synchronous>, transform_indices = @transform_12, window_bounds = array<i64: 128, 32>}, {pipeline_mode = #tpu.pipeline_mode<synchronous>, transform_indices = @transform_13, window_bounds = array<i64: 1, 32>}, {transform_indices = @transform_14, window_bounds = array<i64: 1, 8, 32>}]} {
    %c0 = arith.constant 0 : index
    %c0_0 = arith.constant 0 : index
    %c0_1 = arith.constant 0 : index
    %0 = vector.load %arg1[%c0, %c0_0, %c0_1] : memref<1x8x32xf32, #tpu.memory_space<vmem>>, vector<1x8x32xf32>
    %1 = vector.shape_cast %0 : vector<1x8x32xf32> to vector<8x32xf32>
    %c0_2 = arith.constant 0 : index
    %c0_3 = arith.constant 0 : index
    %2 = vector.load %arg2[%c0_2, %c0_3] : memref<1x32xf32, #tpu.memory_space<vmem>>, vector<1x32xf32>
    %3 = vector.shape_cast %2 : vector<1x32xf32> to vector<32xf32>
    %c0_4 = arith.constant 0 : index
    %c0_5 = arith.constant 0 : index
    %4 = vector.load %arg3[%c0_4, %c0_5] : memref<1x32xf32, #tpu.memory_space<vmem>>, vector<1x32xf32>
    %5 = vector.shape_cast %4 : vector<1x32xf32> to vector<32xf32>
    %cst = arith.constant dense<0.000000e+00> : vector<8xf32>
    %6 = vector.multi_reduction <add>, %1, %cst [1] : vector<8x32xf32> to vector<8xf32>
    %7 = vector.shape_cast %6 : vector<8xf32> to vector<8x1xf32>
    %cst_6 = arith.constant 3.200000e+01 : f32
    %8 = vector.broadcast %cst_6 : f32 to vector<8x1xf32>
    %9 = arith.divf %7, %8 : vector<8x1xf32>
    %10 = vector.broadcast %9 : vector<8x1xf32> to vector<8x32xf32>
    %11 = arith.subf %1, %10 : vector<8x32xf32>
    %12 = arith.mulf %11, %11 : vector<8x32xf32>
    %cst_7 = arith.constant dense<0.000000e+00> : vector<8xf32>
    %13 = vector.multi_reduction <add>, %12, %cst_7 [1] : vector<8x32xf32> to vector<8xf32>
    %14 = vector.shape_cast %13 : vector<8xf32> to vector<8x1xf32>
    %cst_8 = arith.constant 3.200000e+01 : f32
    %15 = vector.broadcast %cst_8 : f32 to vector<8x1xf32>
    %16 = arith.divf %14, %15 : vector<8x1xf32>
    %17 = vector.broadcast %9 : vector<8x1xf32> to vector<8x32xf32>
    %18 = arith.subf %1, %17 : vector<8x32xf32>
    %cst_9 = arith.constant 9.99999974E-6 : f32
    %19 = vector.broadcast %cst_9 : f32 to vector<8x1xf32>
    %20 = arith.addf %16, %19 : vector<8x1xf32>
    %21 = math.rsqrt %20 : vector<8x1xf32>
    %22 = vector.broadcast %21 : vector<8x1xf32> to vector<8x32xf32>
    %23 = arith.mulf %18, %22 : vector<8x32xf32>
    %24 = vector.shape_cast %3 : vector<32xf32> to vector<1x32xf32>
    %25 = vector.broadcast %24 : vector<1x32xf32> to vector<8x32xf32>
    %26 = arith.mulf %23, %25 : vector<8x32xf32>
    %27 = vector.shape_cast %5 : vector<32xf32> to vector<1x32xf32>
    %28 = vector.broadcast %27 : vector<1x32xf32> to vector<8x32xf32>
    %29 = arith.addf %26, %28 : vector<8x32xf32>
    %30 = arith.truncf %29 : vector<8x32xf32> to vector<8x32xbf16>
    %31 = vector.shape_cast %30 : vector<8x32xbf16> to vector<1x8x32xbf16>
    %32 = vector.broadcast %31 : vector<1x8x32xbf16> to vector<4x8x32xbf16>
    %c0_10 = arith.constant 0 : index
    %c0_11 = arith.constant 0 : index
    %c0_12 = arith.constant 0 : index
    %33 = vector.load %arg4[%c0_10, %c0_11, %c0_12] : memref<4x32x8xbf16, #tpu.memory_space<vmem>>, vector<4x32x8xbf16>
    "tpu.trace_start"() <{level = 10 : i32, message = "hsd,hde->hse"}> : () -> ()
    %cst_13 = arith.constant dense<0.000000e+00> : vector<4x8x8xf32>
    %34 = tpu.matmul %32, %33, %cst_13 {dimension_numbers = #tpu.dot_dimension_numbers<[2], [1], [1], [2], [0, 0, 0, 1, 1, 2], [0], [0]>} : vector<4x8x32xbf16>, vector<4x32x8xbf16>, vector<4x8x8xf32> -> vector<4x8x8xf32>
    "tpu.trace_stop"() : () -> ()
    %c0_14 = arith.constant 0 : index
    %c0_15 = arith.constant 0 : index
    %c0_16 = arith.constant 0 : index
    %35 = vector.load %arg5[%c0_14, %c0_15, %c0_16] : memref<4x32x8xbf16, #tpu.memory_space<vmem>>, vector<4x32x8xbf16>
    "tpu.trace_start"() <{level = 10 : i32, message = "hsd,hde->hse"}> : () -> ()
    %cst_17 = arith.constant dense<0.000000e+00> : vector<4x8x8xf32>
    %36 = tpu.matmul %32, %35, %cst_17 {dimension_numbers = #tpu.dot_dimension_numbers<[2], [1], [1], [2], [0, 0, 0, 1, 1, 2], [0], [0]>} : vector<4x8x32xbf16>, vector<4x32x8xbf16>, vector<4x8x8xf32> -> vector<4x8x8xf32>
    "tpu.trace_stop"() : () -> ()
    %c0_18 = arith.constant 0 : index
    %c0_19 = arith.constant 0 : index
    %c0_20 = arith.constant 0 : index
    %37 = vector.load %arg6[%c0_18, %c0_19, %c0_20] : memref<4x32x8xbf16, #tpu.memory_space<vmem>>, vector<4x32x8xbf16>
    "tpu.trace_start"() <{level = 10 : i32, message = "hsd,hde->hse"}> : () -> ()
    %cst_21 = arith.constant dense<0.000000e+00> : vector<4x8x8xf32>
    %38 = tpu.matmul %32, %37, %cst_21 {dimension_numbers = #tpu.dot_dimension_numbers<[2], [1], [1], [2], [0, 0, 0, 1, 1, 2], [0], [0]>} : vector<4x8x32xbf16>, vector<4x32x8xbf16>, vector<4x8x8xf32> -> vector<4x8x8xf32>
    "tpu.trace_stop"() : () -> ()
    %39 = tpu.iota {dimensions = array<i32: 1>} : vector<4x8x8xi32>
    %40 = tpu.iota {dimensions = array<i32: 2>} : vector<4x8x8xi32>
    %41 = arith.cmpi sgt, %40, %39 : vector<4x8x8xi32>
    %42 = arith.truncf %34 : vector<4x8x8xf32> to vector<4x8x8xbf16>
    %43 = arith.truncf %36 : vector<4x8x8xf32> to vector<4x8x8xbf16>
    "tpu.trace_start"() <{level = 10 : i32, message = "hqe,hke->hqk"}> : () -> ()
    %cst_22 = arith.constant dense<0.000000e+00> : vector<4x8x8xf32>
    %44 = tpu.matmul %42, %43, %cst_22 {dimension_numbers = #tpu.dot_dimension_numbers<[2], [2], [1], [1], [0, 0, 0, 1, 1, 1], [0], [0]>} : vector<4x8x8xbf16>, vector<4x8x8xbf16>, vector<4x8x8xf32> -> vector<4x8x8xf32>
    %cst_23 = arith.constant -1.000000e+30 : f32
    "tpu.trace_stop"() : () -> ()
    %45 = vector.broadcast %cst_23 : f32 to vector<4x8x8xf32>
    %46 = arith.select %41, %45, %44 : vector<4x8x8xi1>, vector<4x8x8xf32>
    %cst_24 = arith.constant dense<0xFF800000> : vector<4x8xf32>
    %47 = vector.multi_reduction <maximumf>, %46, %cst_24 [2] : vector<4x8x8xf32> to vector<4x8xf32>
    %48 = vector.shape_cast %47 : vector<4x8xf32> to vector<4x8x1xf32>
    %49 = vector.broadcast %48 : vector<4x8x1xf32> to vector<4x8x8xf32>
    %50 = arith.subf %46, %49 : vector<4x8x8xf32>
    %51 = math.exp %50 : vector<4x8x8xf32>
    %cst_25 = arith.constant dense<0.000000e+00> : vector<4x8xf32>
    %52 = vector.multi_reduction <add>, %51, %cst_25 [2] : vector<4x8x8xf32> to vector<4x8xf32>
    %53 = vector.shape_cast %52 : vector<4x8xf32> to vector<4x8x1xf32>
    %54 = tpu.reciprocal %53 {approx = true} : vector<4x8x1xf32> -> vector<4x8x1xf32>
    %55 = vector.broadcast %54 : vector<4x8x1xf32> to vector<4x8x8xf32>
    %56 = arith.mulf %51, %55 : vector<4x8x8xf32>
    %57 = arith.truncf %56 : vector<4x8x8xf32> to vector<4x8x8xbf16>
    %58 = arith.truncf %38 : vector<4x8x8xf32> to vector<4x8x8xbf16>
    "tpu.trace_start"() <{level = 10 : i32, message = "hqk,hke->hqe"}> : () -> ()
    %cst_26 = arith.constant dense<0.000000e+00> : vector<4x8x8xf32>
    %59 = tpu.matmul %57, %58, %cst_26 {dimension_numbers = #tpu.dot_dimension_numbers<[2], [1], [1], [2], [0, 0, 0, 1, 1, 2], [0], [0]>} : vector<4x8x8xbf16>, vector<4x8x8xbf16>, vector<4x8x8xf32> -> vector<4x8x8xf32>
    "tpu.trace_stop"() : () -> ()
    %60 = arith.truncf %59 : vector<4x8x8xf32> to vector<4x8x8xbf16>
    %c0_27 = arith.constant 0 : index
    %c0_28 = arith.constant 0 : index
    %c0_29 = arith.constant 0 : index
    %61 = vector.load %arg7[%c0_27, %c0_28, %c0_29] : memref<4x8x32xbf16, #tpu.memory_space<vmem>>, vector<4x8x32xbf16>
    "tpu.trace_start"() <{level = 10 : i32, message = "hse,hef->hsf"}> : () -> ()
    %cst_30 = arith.constant dense<0.000000e+00> : vector<4x8x32xf32>
    %62 = tpu.matmul %60, %61, %cst_30 {dimension_numbers = #tpu.dot_dimension_numbers<[2], [1], [1], [2], [0, 0, 0, 1, 1, 2], [0], [0]>} : vector<4x8x8xbf16>, vector<4x8x32xbf16>, vector<4x8x32xf32> -> vector<4x8x32xf32>
    "tpu.trace_stop"() : () -> ()
    %cst_31 = arith.constant dense<0.000000e+00> : vector<8x32xf32>
    %63 = vector.multi_reduction <add>, %62, %cst_31 [0] : vector<4x8x32xf32> to vector<8x32xf32>
    %c0_32 = arith.constant 0 : index
    %c0_33 = arith.constant 0 : index
    %64 = vector.load %arg8[%c0_32, %c0_33] : memref<1x32xf32, #tpu.memory_space<vmem>>, vector<1x32xf32>
    %65 = vector.shape_cast %64 : vector<1x32xf32> to vector<32xf32>
    %66 = vector.shape_cast %65 : vector<32xf32> to vector<1x32xf32>
    %67 = vector.broadcast %66 : vector<1x32xf32> to vector<8x32xf32>
    %68 = arith.addf %63, %67 : vector<8x32xf32>
    %69 = arith.addf %1, %68 : vector<8x32xf32>
    %c0_34 = arith.constant 0 : index
    %c0_35 = arith.constant 0 : index
    %70 = vector.load %arg9[%c0_34, %c0_35] : memref<1x32xf32, #tpu.memory_space<vmem>>, vector<1x32xf32>
    %71 = vector.shape_cast %70 : vector<1x32xf32> to vector<32xf32>
    %c0_36 = arith.constant 0 : index
    %c0_37 = arith.constant 0 : index
    %72 = vector.load %arg10[%c0_36, %c0_37] : memref<1x32xf32, #tpu.memory_space<vmem>>, vector<1x32xf32>
    %73 = vector.shape_cast %72 : vector<1x32xf32> to vector<32xf32>
    %cst_38 = arith.constant dense<0.000000e+00> : vector<8xf32>
    %74 = vector.multi_reduction <add>, %69, %cst_38 [1] : vector<8x32xf32> to vector<8xf32>
    %75 = vector.shape_cast %74 : vector<8xf32> to vector<8x1xf32>
    %cst_39 = arith.constant 3.200000e+01 : f32
    %76 = vector.broadcast %cst_39 : f32 to vector<8x1xf32>
    %77 = arith.divf %75, %76 : vector<8x1xf32>
    %78 = vector.broadcast %77 : vector<8x1xf32> to vector<8x32xf32>
    %79 = arith.subf %69, %78 : vector<8x32xf32>
    %80 = arith.mulf %79, %79 : vector<8x32xf32>
    %cst_40 = arith.constant dense<0.000000e+00> : vector<8xf32>
    %81 = vector.multi_reduction <add>, %80, %cst_40 [1] : vector<8x32xf32> to vector<8xf32>
    %82 = vector.shape_cast %81 : vector<8xf32> to vector<8x1xf32>
    %cst_41 = arith.constant 3.200000e+01 : f32
    %83 = vector.broadcast %cst_41 : f32 to vector<8x1xf32>
    %84 = arith.divf %82, %83 : vector<8x1xf32>
    %85 = vector.broadcast %77 : vector<8x1xf32> to vector<8x32xf32>
    %86 = arith.subf %69, %85 : vector<8x32xf32>
    %cst_42 = arith.constant 9.99999974E-6 : f32
    %87 = vector.broadcast %cst_42 : f32 to vector<8x1xf32>
    %88 = arith.addf %84, %87 : vector<8x1xf32>
    %89 = math.rsqrt %88 : vector<8x1xf32>
    %90 = vector.broadcast %89 : vector<8x1xf32> to vector<8x32xf32>
    %91 = arith.mulf %86, %90 : vector<8x32xf32>
    %92 = vector.shape_cast %71 : vector<32xf32> to vector<1x32xf32>
    %93 = vector.broadcast %92 : vector<1x32xf32> to vector<8x32xf32>
    %94 = arith.mulf %91, %93 : vector<8x32xf32>
    %95 = vector.shape_cast %73 : vector<32xf32> to vector<1x32xf32>
    %96 = vector.broadcast %95 : vector<1x32xf32> to vector<8x32xf32>
    %97 = arith.addf %94, %96 : vector<8x32xf32>
    %98 = arith.truncf %97 : vector<8x32xf32> to vector<8x32xbf16>
    %c0_43 = arith.constant 0 : index
    %c0_44 = arith.constant 0 : index
    %99 = vector.load %arg11[%c0_43, %c0_44] : memref<32x128xbf16, #tpu.memory_space<vmem>>, vector<32x128xbf16>
    %cst_45 = arith.constant dense<0.000000e+00> : vector<8x128xf32>
    %100 = tpu.matmul %98, %99, %cst_45 {dimension_numbers = #tpu.dot_dimension_numbers<[1], [0], [0], [1], [0, 0, 1, 1], [], []>} : vector<8x32xbf16>, vector<32x128xbf16>, vector<8x128xf32> -> vector<8x128xf32>
    %c0_46 = arith.constant 0 : index
    %c0_47 = arith.constant 0 : index
    %101 = vector.load %arg12[%c0_46, %c0_47] : memref<1x128xf32, #tpu.memory_space<vmem>>, vector<1x128xf32>
    %102 = vector.shape_cast %101 : vector<1x128xf32> to vector<128xf32>
    %103 = vector.shape_cast %102 : vector<128xf32> to vector<1x128xf32>
    %104 = vector.broadcast %103 : vector<1x128xf32> to vector<8x128xf32>
    %105 = arith.addf %100, %104 : vector<8x128xf32>
    %cst_48 = arith.constant 5.000000e-01 : f32
    %106 = vector.broadcast %cst_48 : f32 to vector<8x128xf32>
    %107 = arith.mulf %106, %105 : vector<8x128xf32>
    %cst_49 = arith.constant 1.41421354 : f32
    %108 = vector.broadcast %cst_49 : f32 to vector<8x128xf32>
    %109 = arith.divf %105, %108 : vector<8x128xf32>
    %110 = math.erf %109 : vector<8x128xf32>
    %cst_50 = arith.constant 1.000000e+00 : f32
    %111 = vector.broadcast %cst_50 : f32 to vector<8x128xf32>
    %112 = arith.addf %111, %110 : vector<8x128xf32>
    %113 = arith.mulf %107, %112 : vector<8x128xf32>
    %114 = arith.truncf %113 : vector<8x128xf32> to vector<8x128xbf16>
    %c0_51 = arith.constant 0 : index
    %c0_52 = arith.constant 0 : index
    %115 = vector.load %arg13[%c0_51, %c0_52] : memref<128x32xbf16, #tpu.memory_space<vmem>>, vector<128x32xbf16>
    %cst_53 = arith.constant dense<0.000000e+00> : vector<8x32xf32>
    %116 = tpu.matmul %114, %115, %cst_53 {dimension_numbers = #tpu.dot_dimension_numbers<[1], [0], [0], [1], [0, 0, 1, 1], [], []>} : vector<8x128xbf16>, vector<128x32xbf16>, vector<8x32xf32> -> vector<8x32xf32>
    %c0_54 = arith.constant 0 : index
    %c0_55 = arith.constant 0 : index
    %117 = vector.load %arg14[%c0_54, %c0_55] : memref<1x32xf32, #tpu.memory_space<vmem>>, vector<1x32xf32>
    %118 = vector.shape_cast %117 : vector<1x32xf32> to vector<32xf32>
    %119 = vector.shape_cast %118 : vector<32xf32> to vector<1x32xf32>
    %120 = vector.broadcast %119 : vector<1x32xf32> to vector<8x32xf32>
    %121 = arith.addf %116, %120 : vector<8x32xf32>
    %122 = arith.addf %69, %121 : vector<8x32xf32>
    %c0_56 = arith.constant 0 : index
    %c0_57 = arith.constant 0 : index
    %c0_58 = arith.constant 0 : index
    %123 = vector.load %arg15[%c0_56, %c0_57, %c0_58] : memref<1x8x32xf32, #tpu.memory_space<vmem>>, vector<1x8x32xf32>
    %124 = vector.shape_cast %123 : vector<1x8x32xf32> to vector<8x32xf32>
    %125 = vector.shape_cast %122 : vector<8x32xf32> to vector<1x8x32xf32>
    tpu.vector_store %arg15[%c0_56, %c0_57, %c0_58], %125 {strides = array<i32>} : memref<1x8x32xf32, #tpu.memory_space<vmem>>, vector<1x8x32xf32>,
    return
  }
  func.func @transform_0(%arg0: i32) -> (i32, i32, i32) {
    %c0_i32 = arith.constant 0 : i32
    %c0_i32_0 = arith.constant 0 : i32
    %c0_i32_1 = arith.constant 0 : i32
    return %arg0, %c0_i32, %c0_i32_0 : i32, i32, i32
  }
  func.func @transform_1(%arg0: i32) -> (i32, i32) {
    %c0_i32 = arith.constant 0 : i32
    %c0_i32_0 = arith.constant 0 : i32
    %c0_i32_1 = arith.constant 0 : i32
    return %c0_i32, %c0_i32_0 : i32, i32
  }
  func.func @transform_2(%arg0: i32) -> (i32, i32) {
    %c0_i32 = arith.constant 0 : i32
    %c0_i32_0 = arith.constant 0 : i32
    %c0_i32_1 = arith.constant 0 : i32
    return %c0_i32, %c0_i32_0 : i32, i32
  }
  func.func @transform_3(%arg0: i32) -> (i32, i32, i32) {
    %c0_i32 = arith.constant 0 : i32
    %c0_i32_0 = arith.constant 0 : i32
    %c0_i32_1 = arith.constant 0 : i32
    %c0_i32_2 = arith.constant 0 : i32
    return %c0_i32, %c0_i32_0, %c0_i32_1 : i32, i32, i32
  }
  func.func @transform_4(%arg0: i32) -> (i32, i32, i32) {
    %c0_i32 = arith.constant 0 : i32
    %c0_i32_0 = arith.constant 0 : i32
    %c0_i32_1 = arith.constant 0 : i32
    %c0_i32_2 = arith.constant 0 : i32
    return %c0_i32, %c0_i32_0, %c0_i32_1 : i32, i32, i32
  }
  func.func @transform_5(%arg0: i32) -> (i32, i32, i32) {
    %c0_i32 = arith.constant 0 : i32
    %c0_i32_0 = arith.constant 0 : i32
    %c0_i32_1 = arith.constant 0 : i32
    %c0_i32_2 = arith.constant 0 : i32
    return %c0_i32, %c0_i32_0, %c0_i32_1 : i32, i32, i32
  }
  func.func @transform_6(%arg0: i32) -> (i32, i32, i32) {
    %c0_i32 = arith.constant 0 : i32
    %c0_i32_0 = arith.constant 0 : i32
    %c0_i32_1 = arith.constant 0 : i32
    %c0_i32_2 = arith.constant 0 : i32
    return %c0_i32, %c0_i32_0, %c0_i32_1 : i32, i32, i32
  }
  func.func @transform_7(%arg0: i32) -> (i32, i32) {
    %c0_i32 = arith.constant 0 : i32
    %c0_i32_0 = arith.constant 0 : i32
    %c0_i32_1 = arith.constant 0 : i32
    return %c0_i32, %c0_i32_0 : i32, i32
  }
  func.func @transform_8(%arg0: i32) -> (i32, i32) {
    %c0_i32 = arith.constant 0 : i32
    %c0_i32_0 = arith.constant 0 : i32
    %c0_i32_1 = arith.constant 0 : i32
    return %c0_i32, %c0_i32_0 : i32, i32
  }
  func.func @transform_9(%arg0: i32) -> (i32, i32) {
    %c0_i32 = arith.constant 0 : i32
    %c0_i32_0 = arith.constant 0 : i32
    %c0_i32_1 = arith.constant 0 : i32
    return %c0_i32, %c0_i32_0 : i32, i32
  }
  func.func @transform_10(%arg0: i32) -> (i32, i32) {
    %c0_i32 = arith.constant 0 : i32
    %c0_i32_0 = arith.constant 0 : i32
    %c0_i32_1 = arith.constant 0 : i32
    return %c0_i32, %c0_i32_0 : i32, i32
  }
  func.func @transform_11(%arg0: i32) -> (i32, i32) {
    %c0_i32 = arith.constant 0 : i32
    %c0_i32_0 = arith.constant 0 : i32
    %c0_i32_1 = arith.constant 0 : i32
    return %c0_i32, %c0_i32_0 : i32, i32
  }
  func.func @transform_12(%arg0: i32) -> (i32, i32) {
    %c0_i32 = arith.constant 0 : i32
    %c0_i32_0 = arith.constant 0 : i32
    %c0_i32_1 = arith.constant 0 : i32
    return %c0_i32, %c0_i32_0 : i32, i32
  }
  func.func @transform_13(%arg0: i32) -> (i32, i32) {
    %c0_i32 = arith.constant 0 : i32
    %c0_i32_0 = arith.constant 0 : i32
    %c0_i32_1 = arith.constant 0 : i32
    return %c0_i32, %c0_i32_0 : i32, i32
  }
  func.func @transform_14(%arg0: i32) -> (i32, i32, i32) {
    %c0_i32 = arith.constant 0 : i32
    %c0_i32_0 = arith.constant 0 : i32
    %c0_i32_1 = arith.constant 0 : i32
    return %arg0, %c0_i32, %c0_i32_0 : i32, i32, i32
  }
}

</mosaic_0001>

<bundles_post_ra>
// kernel: tpu_custom_call.1
= control target key start
LH: loop header
LB: loop body
LE: loop exit
PB: predicated region body
PF: predicated region fallthrough
CT: control target
= control target key end

     0   :  { %s4298_s0 = inlined_call_operand.hbm [shape: f32[2,8,32], index: 0, kind: input, shape index: {}]   ;;  %s4299_s1 = inlined_call_operand.hbm [shape: f32[1,32], index: 1, kind: input, shape index: {}]   ;;  %s4300_s2 = inlined_call_operand.hbm [shape: f32[1,32], index: 2, kind: input, shape index: {}]   ;;  %s4301_s3 = inlined_call_operand.hbm [shape: bf16[4,32,8], index: 3, kind: input, shape index: {}]   ;;  %s4302_s4 = inlined_call_operand.hbm [shape: bf16[4,32,8], index: 4, kind: input, shape index: {}]   ;;  %s4303_s5 = inlined_call_operand.hbm [shape: bf16[4,32,8], index: 5, kind: input, shape index: {}]   ;;  %s4304_s6 = inlined_call_operand.hbm [shape: bf16[4,8,32], index: 6, kind: input, shape index: {}]   ;;  %s4305_s7 = inlined_call_operand.hbm [shape: f32[1,32], index: 7, kind: input, shape index: {}]   ;;  %s4306_s8 = inlined_call_operand.hbm [shape: f32[1,32], index: 8, kind: input, shape index: {}]   ;;  %s4307_s9 = inlined_call_operand.hbm [shape: f32[1,32], index: 9, kind: input, shape index: {}]   ;;  %s4308_s10 = inlined_call_operand.hbm [shape: bf16[32,128], index: 10, kind: input, shape index: {}]   ;;  %s4309_s11 = inlined_call_operand.hbm [shape: f32[1,128], index: 11, kind: input, shape index: {}]   ;;  %s4310_s12 = inlined_call_operand.hbm [shape: bf16[128,32], index: 12, kind: input, shape index: {}]   ;;  %s4311_s13 = inlined_call_operand.hbm [shape: f32[1,32], index: 13, kind: input, shape index: {}]   ;;  %s4312_s14 = inlined_call_operand.hbm [shape: f32[2,8,32], index: 14, kind: output, shape index: {}]  }
   0x1   :  { %4322 = sst [smem:[#allocation38_spill]] %s4298_s0 }
   0x2   :  { %4323 = sst [smem:[#allocation39_spill]] %s4299_s1 }
   0x3   :  { %4324 = sst [smem:[#allocation40_spill]] %s4300_s2 }
   0x4   :  { %4325 = sst [smem:[#allocation41_spill]] %s4301_s3 }
   0x5   :  { %4326 = sst [smem:[#allocation42_spill]] %s4312_s14 }
   0x6   :  { %19 = vsyncpa [#allocation3], 0 }
   0x7   :  { %21 = vsyncpa [#allocation3 + $0x1], 0 }
   0x8   :  { %22 = vsyncpa [#allocation6], 0 }
   0x9   :  { %23 = vsyncpa [#allocation9], 0 }
   0xa   :  { %24 = vsyncpa [#allocation12], 0 }
   0xb   :  { %25 = vsyncpa [#allocation15], 0 }
   0xc   :  { %26 = vsyncpa [#allocation18], 0 }
   0xd   :  { %27 = vsyncpa [#allocation21], 0 }
   0xe   :  { %28 = vsyncpa [#allocation24], 0 }
   0xf   :  { %29 = vsyncpa [#allocation4], 0 }
  0x10   :  { %31 = vsyncpa [#allocation4 + $0x1], 0  ;;  %s3631_s29 = smov 0   ;;  %s3633_s30 = smov 0  }
  0x11   :  { %s3635_s15 = smov 0   ;;  %s3637_s16 = smov 0  }
  0x12 LB: > { %4327 = sst [smem:[#allocation35_spill]] %s3523_s29  ;;  %s3537_s17 = smov [#allocation5]   ;;  %s3535_s16 = sphi %s3637_s16, %s4369_s16   ;;  %s3531_s15 = sphi %s3635_s15, %s4368_s15   ;;  %s3527_s30 = sphi %s3633_s30, %s4367_s30   ;;  %s3523_s29 = sphi %s3631_s29, %s4366_s29  }
  0x13   : > { %s380_s18 = sshll.u32 %s3537_s17, 4  ;;  %s3652_s19 = sadd.s32 4294967295, %s3535_s16   ;;  %s3657_s18 = int_to_ptr.vmem [resolvable:$true] %s380_s18 }
  0x14   : > { %4328 = sst [smem:[#allocation36_spill]] %s3652_s19  ;;  %p2439_p0 = scmp.ge.s32.totalorder %s3535_s16, 1 }
  0x15   : > { %p4319_p1 = scmp.eq.s32.totalorder %s3652_s19, 0  ;;  %p367_p2 = scmp.lt.s32.totalorder %s3535_s16, 3 }
  0x16   : > { %s3538_s21 = smov [#allocation8]   ;;  %s3539_s24 = smov [#allocation11]  }
  0x17   : > { %p3659_p3 = pnand %p2439_p0, %p367_p2  ;;  %s401_s22 = sshll.u32 %s3538_s21, 4  ;;  %s3666_s22 = int_to_ptr.vmem [resolvable:$true] %s401_s22 }
  0x18   : > { %s427_s25 = sshll.u32 %s3539_s24, 4  ;;  %s4332_s1 = sld [smem:[#allocation39_spill]]  ;;  %s3674_s25 = int_to_ptr.vmem [resolvable:$true] %s427_s25 }
  0x19   : > { %s4329_s20 = scalar_select %p3659_p3, 1, 0 }
  0x1a   : > { %p2866_p5 = pneg %p3659_p3 }
  0x1b   : > { %4330 = sst [smem:[#allocation37_spill]] %s4329_s20 }
  0x1c   : > { %p3670_p6 = pnand %p2866_p5, %p4319_p1 }
  0x1e   : > { %s3047_s28 = scalar_lea.hbm %s4332_s1, 16  ;;  %p3684_p8 = pneg %p3670_p6 }
  0x1f   : > { %p3048_p7 = scmp.ne.s32.totalorder %s4332_s1, %s3047_s28  ;;  %p3054_p11 = scmp.lt.u32.totalorder %s3047_s28, %s4332_s1 }
  0x21   : > { %p3050_p9 = pnand %p3684_p8, %p3048_p7 }
  0x23   : > { %p3051_p10 = pneg %p3050_p9 }
  0x25   : > { %p3056_p12 = pnand %p3054_p11, %p3051_p10 }
  0x27   : > { %3059 = shalt.err (!%p3056_p12)
}
  0x28   : > { %s3060_s14 = scalar_lea.vmem %s3657_s18, 16  ;;  %s3067_s26 = scalar_lea.vmem %s3657_s18, 32 }
  0x29   : > { %p3061_p13 = scmp.ne.s32.totalorder %s3657_s18, %s3060_s14  ;;  %p3068_p5 = scmp.lt.s32.totalorder %s3657_s18, %s3657_s18 }
  0x2a   : > { %p3069_p7 = scmp.lt.s32.totalorder %s3067_s26, %s3060_s14 }
  0x2b   : > { %p3063_p0 = pnand %p3061_p13, %p3684_p8 }
  0x2c   : > { %p3070_p9 = por %p3069_p7, %p3068_p5 }
  0x2d   : > { %p3064_p2 = pneg %p3063_p0 }
  0x2f   : > { %p3071_p4 = pnand %p3070_p9, %p3064_p2 }
  0x31   : > { %3074 = shalt.err (!%p3071_p4)
}
  0x32   : > { %2869 = dma.hbm_to_vmem [thread:$0]  (!%p3670_p6), %s4332_s1, 16, %s3657_s18, [#allocation6]  }
  0x33   : > { %s4334_s3 = sld [smem:[#allocation41_spill]] }
  0x39   : > { %s3075_s24 = scalar_lea.hbm %s4334_s3, 1024 }
  0x3a   : > { %p3076_p10 = scmp.ne.s32.totalorder %s4334_s3, %s3075_s24  ;;  %p3082_p4 = scmp.lt.u32.totalorder %s3075_s24, %s4334_s3 }
  0x3c   : > { %p3078_p11 = pnand %p3076_p10, %p3684_p8 }
  0x3e   : > { %p3079_p12 = pneg %p3078_p11 }
  0x40   : > { %p3084_p13 = pnand %p3082_p4, %p3079_p12 }
  0x42   : > { %3087 = shalt.err (!%p3084_p13)
}
  0x43   : > { %s3088_s18 = scalar_lea.vmem %s3666_s22, 1024  ;;  %p3096_p7 = scmp.lt.s32.totalorder %s3666_s22, %s3666_s22 }
  0x44   : > { %p3089_p0 = scmp.ne.s32.totalorder %s3666_s22, %s3088_s18  ;;  %p3097_p9 = scmp.lt.s32.totalorder %s3088_s18, %s3088_s18 }
  0x46   : > { %p3091_p2 = pnand %p3089_p0, %p3684_p8  ;;  %p3098_p10 = por %p3097_p9, %p3096_p7 }
  0x48   : > { %p3092_p5 = pneg %p3091_p2 }
  0x4a   : > { %p3099_p11 = pnand %p3098_p10, %p3092_p5 }
  0x4c   : > { %3102 = shalt.err (!%p3099_p11)
}
  0x4d   : > { %s3540_s0 = smov 64   ;;  %s3541_s19 = smov 4  }
  0x4e   : > { %2875 = dma.hbm_to_vmem [thread:$0]  (!%p3670_p6), %s4334_s3, 1024, %s3666_s22, [#allocation9], %s3540_s0, %s3540_s0, %s3541_s19  }
  0x4f   : > { %s3103_s24 = scalar_lea.hbm %s4303_s5, 1024 }
  0x50   : > { %p3104_p12 = scmp.ne.s32.totalorder %s4303_s5, %s3103_s24  ;;  %p3110_p0 = scmp.lt.u32.totalorder %s3103_s24, %s4303_s5 }
  0x52   : > { %p3106_p4 = pnand %p3104_p12, %p3684_p8 }
  0x54   : > { %p3107_p13 = pneg %p3106_p4 }
  0x56   : > { %p3112_p2 = pnand %p3110_p0, %p3107_p13 }
  0x58   : > { %3115 = shalt.err (!%p3112_p2)
}
  0x59   : > { %s3116_s22 = scalar_lea.vmem %s3674_s25, 1024  ;;  %p3124_p10 = scmp.lt.s32.totalorder %s3674_s25, %s3674_s25 }
  0x5a   : > { %p3117_p5 = scmp.ne.s32.totalorder %s3674_s25, %s3116_s22  ;;  %p3125_p11 = scmp.lt.s32.totalorder %s3116_s22, %s3116_s22 }
  0x5c   : > { %p3119_p7 = pnand %p3117_p5, %p3684_p8  ;;  %p3126_p12 = por %p3125_p11, %p3124_p10 }
  0x5e   : > { %p3120_p9 = pneg %p3119_p7 }
  0x60   : > { %p3127_p4 = pnand %p3126_p12, %p3120_p9 }
  0x62   : > { %3130 = shalt.err (!%p3127_p4)
}
  0x63   : > { %2881 = dma.hbm_to_vmem [thread:$0]  (!%p3670_p6), %s4303_s5, 1024, %s3674_s25, [#allocation12], %s3540_s0, %s3540_s0, %s3541_s19  }
  0x64   : > { %s3542_s27 = smov [#allocation14]   ;;  %s3543_s17 = smov [#allocation17]  }
  0x65   : > { %s454_s28 = sshll.u32 %s3542_s27, 4  ;;  %s476_s24 = sshll.u32 %s3543_s17, 4  ;;  %s455_s28 = int_to_ptr.vmem [resolvable:$true] %s454_s28  ;;  %s477_s24 = int_to_ptr.vmem [resolvable:$true] %s476_s24 }
  0x66   : > { %s3131_s18 = scalar_lea.hbm %s4305_s7, 16 }
  0x67   : > { %p3132_p13 = scmp.ne.s32.totalorder %s4305_s7, %s3131_s18  ;;  %p3138_p5 = scmp.lt.u32.totalorder %s3131_s18, %s4305_s7 }
  0x69   : > { %p3134_p0 = pnand %p3132_p13, %p3684_p8 }
  0x6b   : > { %p3135_p2 = pneg %p3134_p0 }
  0x6d   : > { %p3140_p7 = pnand %p3138_p5, %p3135_p2 }
  0x6f   : > { %3143 = shalt.err (!%p3140_p7)
}
  0x70   : > { %s3144_s25 = scalar_lea.vmem %s455_s28, 16  ;;  %s3151_s20 = scalar_lea.vmem %s455_s28, 32 }
  0x71   : > { %p3145_p9 = scmp.ne.s32.totalorder %s455_s28, %s3144_s25  ;;  %p3152_p12 = scmp.lt.s32.totalorder %s455_s28, %s455_s28 }
  0x72   : > { %p3153_p4 = scmp.lt.s32.totalorder %s3151_s20, %s3144_s25 }
  0x73   : > { %p3147_p10 = pnand %p3145_p9, %p3684_p8 }
  0x74   : > { %p3154_p1 = por %p3153_p4, %p3152_p12 }
  0x75   : > { %p3148_p11 = pneg %p3147_p10 }
  0x77   : > { %p3155_p3 = pnand %p3154_p1, %p3148_p11 }
  0x79   : > { %3158 = shalt.err (!%p3155_p3)
}
  0x7a   : > { %2887 = dma.hbm_to_vmem [thread:$0]  (!%p3670_p6), %s4305_s7, 16, %s455_s28, [#allocation15]  }
  0x7b   : > { %s3159_s14 = scalar_lea.hbm %s4307_s9, 16 }
  0x7c   : > { %p3160_p13 = scmp.ne.s32.totalorder %s4307_s9, %s3159_s14  ;;  %p3166_p3 = scmp.lt.u32.totalorder %s3159_s14, %s4307_s9 }
  0x7e   : > { %p3162_p0 = pnand %p3160_p13, %p3684_p8 }
  0x80   : > { %p3163_p1 = pneg %p3162_p0 }
  0x82   : > { %p3168_p2 = pnand %p3166_p3, %p3163_p1 }
  0x84   : > { %3171 = shalt.err (!%p3168_p2)
}
  0x85   : > { %s3172_s25 = scalar_lea.vmem %s477_s24, 16  ;;  %s3179_s28 = scalar_lea.vmem %s477_s24, 32 }
  0x86   : > { %p3173_p5 = scmp.ne.s32.totalorder %s477_s24, %s3172_s25  ;;  %p3180_p10 = scmp.lt.s32.totalorder %s477_s24, %s477_s24 }
  0x87   : > { %p3181_p11 = scmp.lt.s32.totalorder %s3179_s28, %s3172_s25 }
  0x88   : > { %p3175_p7 = pnand %p3173_p5, %p3684_p8 }
  0x89   : > { %p3182_p12 = por %p3181_p11, %p3180_p10 }
  0x8a   : > { %p3176_p9 = pneg %p3175_p7 }
  0x8c   : > { %p3183_p4 = pnand %p3182_p12, %p3176_p9 }
  0x8e   : > { %3186 = shalt.err (!%p3183_p4)
}
  0x8f   : > { %2893 = dma.hbm_to_vmem [thread:$0]  (!%p3670_p6), %s4307_s9, 16, %s477_s24, [#allocation18]  }
  0x90   : > { %s3544_s27 = smov [#allocation20]   ;;  %s3545_s17 = smov [#allocation7]  }
  0x91   : > { %s500_s29 = sshll.u32 %s3544_s27, 4  ;;  %s391_s14 = sshll.u32 %s3545_s17, 4  ;;  %s501_s29 = int_to_ptr.vmem [resolvable:$true] %s500_s29  ;;  %s392_s14 = int_to_ptr.vmem [resolvable:$true] %s391_s14 }
  0x92   : > { %s3187_s22 = scalar_lea.hbm %s4309_s11, 16 }
  0x93   : > { %p3188_p13 = scmp.ne.s32.totalorder %s4309_s11, %s3187_s22  ;;  %p3194_p3 = scmp.lt.u32.totalorder %s3187_s22, %s4309_s11 }
  0x95   : > { %p3190_p0 = pnand %p3188_p13, %p3684_p8 }
  0x97   : > { %p3191_p1 = pneg %p3190_p0 }
  0x99   : > { %p3196_p2 = pnand %p3194_p3, %p3191_p1 }
  0x9b   : > { %3199 = shalt.err (!%p3196_p2)
}
  0x9c   : > { %s3200_s24 = scalar_lea.vmem %s501_s29, 16  ;;  %s3207_s3 = scalar_lea.vmem %s501_s29, 32 }
  0x9d   : > { %p3201_p5 = scmp.ne.s32.totalorder %s501_s29, %s3200_s24  ;;  %p3208_p10 = scmp.lt.s32.totalorder %s501_s29, %s501_s29 }
  0x9e   : > { %p3209_p11 = scmp.lt.s32.totalorder %s3207_s3, %s3200_s24 }
  0x9f   : > { %p3203_p7 = pnand %p3201_p5, %p3684_p8 }
  0xa0   : > { %p3210_p12 = por %p3209_p11, %p3208_p10 }
  0xa1   : > { %p3204_p9 = pneg %p3203_p7 }
  0xa3   : > { %p3211_p4 = pnand %p3210_p12, %p3204_p9 }
  0xa5   : > { %3214 = shalt.err (!%p3211_p4)
}
  0xa6   : > { %2899 = dma.hbm_to_vmem [thread:$0]  (!%p3670_p6), %s4309_s11, 16, %s501_s29, [#allocation21]  }
  0xa7   : > { %s4335_s2 = sld [smem:[#allocation40_spill]] }
  0xad   : > { %s3215_s22 = scalar_lea.hbm %s4335_s2, 16 }
  0xae   : > { %p3216_p13 = scmp.ne.s32.totalorder %s4335_s2, %s3215_s22  ;;  %p3222_p3 = scmp.lt.u32.totalorder %s3215_s22, %s4335_s2 }
  0xb0   : > { %p3218_p0 = pnand %p3216_p13, %p3684_p8 }
  0xb2   : > { %p3219_p1 = pneg %p3218_p0 }
  0xb4   : > { %p3224_p2 = pnand %p3222_p3, %p3219_p1 }
  0xb6   : > { %3227 = shalt.err (!%p3224_p2)
}
  0xb7   : > { %s3228_s24 = scalar_lea.vmem %s392_s14, 16  ;;  %s3235_s29 = scalar_lea.vmem %s392_s14, 32 }
  0xb8   : > { %p3229_p5 = scmp.ne.s32.totalorder %s392_s14, %s3228_s24  ;;  %p3236_p10 = scmp.lt.s32.totalorder %s392_s14, %s392_s14 }
  0xb9   : > { %p3237_p11 = scmp.lt.s32.totalorder %s3235_s29, %s3228_s24 }
  0xba   : > { %p3231_p7 = pnand %p3229_p5, %p3684_p8 }
  0xbb   : > { %p3238_p12 = por %p3237_p11, %p3236_p10 }
  0xbc   : > { %p3232_p9 = pneg %p3231_p7 }
  0xbe   : > { %p3239_p4 = pnand %p3238_p12, %p3232_p9 }
  0xc0   : > { %3242 = shalt.err (!%p3239_p4)
}
  0xc1   : > { %2872 = dma.hbm_to_vmem [thread:$0]  (!%p3670_p6), %s4335_s2, 16, %s392_s14, [#allocation6]  }
  0xc2   : > { %s3546_s17 = smov [#allocation10]   ;;  %s3547_s18 = smov [#allocation13]  }
  0xc3   : > { %s414_s26 = sshll.u32 %s3546_s17, 4  ;;  %s440_s22 = sshll.u32 %s3547_s18, 4  ;;  %s415_s26 = int_to_ptr.vmem [resolvable:$true] %s414_s26  ;;  %s441_s22 = int_to_ptr.vmem [resolvable:$true] %s440_s22 }
  0xc4   : > { %s3243_s28 = scalar_lea.hbm %s4302_s4, 1024 }
  0xc5   : > { %p3244_p13 = scmp.ne.s32.totalorder %s4302_s4, %s3243_s28  ;;  %p3250_p3 = scmp.lt.u32.totalorder %s3243_s28, %s4302_s4 }
  0xc7   : > { %p3246_p0 = pnand %p3244_p13, %p3684_p8 }
  0xc9   : > { %p3247_p1 = pneg %p3246_p0 }
  0xcb   : > { %p3252_p2 = pnand %p3250_p3, %p3247_p1 }
  0xcd   : > { %3255 = shalt.err (!%p3252_p2)
}
  0xce   : > { %s3256_s14 = scalar_lea.vmem %s415_s26, 1024  ;;  %p3264_p10 = scmp.lt.s32.totalorder %s415_s26, %s415_s26 }
  0xcf   : > { %p3257_p5 = scmp.ne.s32.totalorder %s415_s26, %s3256_s14  ;;  %p3265_p11 = scmp.lt.s32.totalorder %s3256_s14, %s3256_s14 }
  0xd1   : > { %p3259_p7 = pnand %p3257_p5, %p3684_p8  ;;  %p3266_p12 = por %p3265_p11, %p3264_p10 }
  0xd3   : > { %p3260_p9 = pneg %p3259_p7 }
  0xd5   : > { %p3267_p4 = pnand %p3266_p12, %p3260_p9 }
  0xd7   : > { %3270 = shalt.err (!%p3267_p4)
}
  0xd8   : > { %2878 = dma.hbm_to_vmem [thread:$0]  (!%p3670_p6), %s4302_s4, 1024, %s415_s26, [#allocation9], %s3540_s0, %s3540_s0, %s3541_s19  }
  0xd9   : > { %s3271_s25 = scalar_lea.hbm %s4304_s6, 256 }
  0xda   : > { %p3272_p13 = scmp.ne.s32.totalorder %s4304_s6, %s3271_s25  ;;  %p3278_p3 = scmp.lt.u32.totalorder %s3271_s25, %s4304_s6 }
  0xdc   : > { %p3274_p0 = pnand %p3272_p13, %p3684_p8 }
  0xde   : > { %p3275_p1 = pneg %p3274_p0 }
  0xe0   : > { %p3280_p2 = pnand %p3278_p3, %p3275_p1 }
  0xe2   : > { %3283 = shalt.err (!%p3280_p2)
}
  0xe3   : > { %s3284_s3 = scalar_lea.vmem %s441_s22, 256  ;;  %p3292_p10 = scmp.lt.s32.totalorder %s441_s22, %s441_s22 }
  0xe4   : > { %p3285_p5 = scmp.ne.s32.totalorder %s441_s22, %s3284_s3  ;;  %p3293_p11 = scmp.lt.s32.totalorder %s3284_s3, %s3284_s3 }
  0xe6   : > { %p3287_p7 = pnand %p3285_p5, %p3684_p8  ;;  %p3294_p12 = por %p3293_p11, %p3292_p10 }
  0xe8   : > { %p3288_p9 = pneg %p3287_p7 }
  0xea   : > { %p3295_p4 = pnand %p3294_p12, %p3288_p9 }
  0xec   : > { %3298 = shalt.err (!%p3295_p4)
}
  0xed   : > { %2884 = dma.hbm_to_vmem [thread:$0]  (!%p3670_p6), %s4304_s6, 256, %s441_s22, [#allocation12], %s3540_s0, %s3540_s0, %s3541_s19  }
  0xee   : > { %s3548_s27 = smov [#allocation16]   ;;  %s3549_s18 = smov [#allocation19]  }
  0xef   : > { %s465_s17 = sshll.u32 %s3548_s27, 4  ;;  %s486_s1 = sshll.u32 %s3549_s18, 4  ;;  %s466_s17 = int_to_ptr.vmem [resolvable:$true] %s465_s17  ;;  %s487_s1 = int_to_ptr.vmem [resolvable:$true] %s486_s1 }
  0xf0   : > { %s3299_s20 = scalar_lea.hbm %s4306_s8, 16 }
  0xf1   : > { %p3300_p13 = scmp.ne.s32.totalorder %s4306_s8, %s3299_s20  ;;  %p3306_p3 = scmp.lt.u32.totalorder %s3299_s20, %s4306_s8 }
  0xf3   : > { %p3302_p0 = pnand %p3300_p13, %p3684_p8 }
  0xf5   : > { %p3303_p1 = pneg %p3302_p0 }
  0xf7   : > { %p3308_p2 = pnand %p3306_p3, %p3303_p1 }
  0xf9   : > { %3311 = shalt.err (!%p3308_p2)
}
  0xfa   : > { %s3312_s22 = scalar_lea.vmem %s466_s17, 16  ;;  %s3319_s14 = scalar_lea.vmem %s466_s17, 32 }
  0xfb   : > { %p3313_p5 = scmp.ne.s32.totalorder %s466_s17, %s3312_s22  ;;  %p3320_p10 = scmp.lt.s32.totalorder %s466_s17, %s466_s17 }
  0xfc   : > { %p3321_p11 = scmp.lt.s32.totalorder %s3319_s14, %s3312_s22 }
  0xfd   : > { %p3315_p7 = pnand %p3313_p5, %p3684_p8 }
  0xfe   : > { %p3322_p12 = por %p3321_p11, %p3320_p10 }
  0xff   : > { %p3316_p9 = pneg %p3315_p7 }
 0x101   : > { %p3323_p4 = pnand %p3322_p12, %p3316_p9 }
 0x103   : > { %3326 = shalt.err (!%p3323_p4)
}
 0x104   : > { %2890 = dma.hbm_to_vmem [thread:$0]  (!%p3670_p6), %s4306_s8, 16, %s466_s17, [#allocation15]  }
 0x105   : > { %s3327_s20 = scalar_lea.hbm %s4308_s10, 256 }
 0x106   : > { %p3328_p13 = scmp.ne.s32.totalorder %s4308_s10, %s3327_s20  ;;  %p3334_p3 = scmp.lt.u32.totalorder %s3327_s20, %s4308_s10 }
 0x108   : > { %p3330_p0 = pnand %p3328_p13, %p3684_p8 }
 0x10a   : > { %p3331_p1 = pneg %p3330_p0 }
 0x10c   : > { %p3336_p2 = pnand %p3334_p3, %p3331_p1 }
 0x10e   : > { %3339 = shalt.err (!%p3336_p2)
}
 0x10f   : > { %s3340_s22 = scalar_lea.vmem %s487_s1, 256  ;;  %p3348_p10 = scmp.lt.s32.totalorder %s487_s1, %s487_s1 }
 0x110   : > { %p3341_p5 = scmp.ne.s32.totalorder %s487_s1, %s3340_s22  ;;  %p3349_p11 = scmp.lt.s32.totalorder %s3340_s22, %s3340_s22 }
 0x112   : > { %p3343_p7 = pnand %p3341_p5, %p3684_p8  ;;  %p3350_p12 = por %p3349_p11, %p3348_p10 }
 0x114   : > { %p3344_p9 = pneg %p3343_p7 }
 0x116   : > { %p3351_p4 = pnand %p3350_p12, %p3344_p9 }
 0x118   : > { %3354 = shalt.err (!%p3351_p4)
}
 0x119   : > { %2896 = dma.hbm_to_vmem [thread:$0]  (!%p3670_p6), %s4308_s10, 256, %s487_s1, [#allocation18], %s3540_s0, %s3540_s0, %s3541_s19  }
 0x11a   : > { %s3550_s27 = smov [#allocation22]   ;;  %s3551_s25 = smov [#allocation23]  }
 0x11b   : > { %s510_s18 = sshll.u32 %s3550_s27, 4  ;;  %s524_s28 = sshll.u32 %s3551_s25, 4  ;;  %s511_s18 = int_to_ptr.vmem [resolvable:$true] %s510_s18  ;;  %s525_s28 = int_to_ptr.vmem [resolvable:$true] %s524_s28 }
 0x11c   : > { %s3355_s29 = scalar_lea.hbm %s4310_s12, 1024 }
 0x11d   : > { %p3356_p13 = scmp.ne.s32.totalorder %s4310_s12, %s3355_s29  ;;  %p3362_p3 = scmp.lt.u32.totalorder %s3355_s29, %s4310_s12 }
 0x11f   : > { %p3358_p0 = pnand %p3356_p13, %p3684_p8 }
 0x121   : > { %p3359_p1 = pneg %p3358_p0 }
 0x123   : > { %p3364_p2 = pnand %p3362_p3, %p3359_p1 }
 0x125   : > { %3367 = shalt.err (!%p3364_p2)
}
 0x126   : > { %s3368_s1 = scalar_lea.vmem %s511_s18, 1024  ;;  %p3376_p10 = scmp.lt.s32.totalorder %s511_s18, %s511_s18 }
 0x127   : > { %p3369_p5 = scmp.ne.s32.totalorder %s511_s18, %s3368_s1  ;;  %p3377_p11 = scmp.lt.s32.totalorder %s3368_s1, %s3368_s1 }
 0x129   : > { %p3371_p7 = pnand %p3369_p5, %p3684_p8  ;;  %p3378_p12 = por %p3377_p11, %p3376_p10 }
 0x12b   : > { %p3372_p9 = pneg %p3371_p7 }
 0x12d   : > { %p3379_p4 = pnand %p3378_p12, %p3372_p9 }
 0x12f   : > { %3382 = shalt.err (!%p3379_p4)
}
 0x130   : > { %2902 = dma.hbm_to_vmem [thread:$0]  (!%p3670_p6), %s4310_s12, 1024, %s511_s18, [#allocation21], %s3540_s0, %s3540_s0, %s3541_s19  }
 0x131   : > { %s3383_s24 = scalar_lea.hbm %s4311_s13, 16 }
 0x132   : > { %p3384_p13 = scmp.ne.s32.totalorder %s4311_s13, %s3383_s24  ;;  %p3390_p3 = scmp.lt.u32.totalorder %s3383_s24, %s4311_s13 }
 0x134   : > { %p3386_p0 = pnand %p3384_p13, %p3684_p8 }
 0x136   : > { %p3387_p1 = pneg %p3386_p0 }
 0x138   : > { %p3392_p2 = pnand %p3390_p3, %p3387_p1 }
 0x13a   : > { %3395 = shalt.err (!%p3392_p2)
}
 0x13b   : > { %s3396_s17 = scalar_lea.vmem %s525_s28, 16  ;;  %s3403_s0 = scalar_lea.vmem %s525_s28, 32 }
 0x13c   : > { %p3397_p5 = scmp.ne.s32.totalorder %s525_s28, %s3396_s17  ;;  %p3404_p10 = scmp.lt.s32.totalorder %s525_s28, %s525_s28 }
 0x13d   : > { %p3405_p11 = scmp.lt.s32.totalorder %s3403_s0, %s3396_s17 }
 0x13e   : > { %p3399_p7 = pnand %p3397_p5, %p3684_p8 }
 0x13f   : > { %p3406_p12 = por %p3405_p11, %p3404_p10 }
 0x140   : > { %p3400_p9 = pneg %p3399_p7 }
 0x142   : > { %p3407_p4 = pnand %p3406_p12, %p3400_p9 }
 0x144   : > { %3410 = shalt.err (!%p3407_p4)
}
 0x145   : > { %s4336_s21 = sld [smem:[#allocation35_spill]]  ;;  %s4337_s1 = sld [smem:[#allocation36_spill]] }
 0x146   : > { %2905 = dma.hbm_to_vmem [thread:$0]  (!%p3670_p6), %s4311_s13, 16, %s525_s28, [#allocation24]  }
 0x147   : > { %s2438_s14 = sadd.s32 4294967294, %s3535_s16   ;;  %s3952_s23 = sadd.s32 1, %s3535_s16  }
 0x148   : > { %s44_s27 = sadd.s32 1, %s3531_s15  ;;  %s41_s25 = ssub.s32 %s3535_s16, %s3952_s23 }
 0x149   : > { %p51_p8 = scmp.ne.s32.totalorder %s3531_s15, %s3527_s30  ;;  %p42_p13 = scmp.eq.s32.totalorder %s41_s25, 0 }
 0x14a   : > { %p52_p0 = scmp.eq.s32.totalorder %s3535_s16, 0  ;;  %p360_p9 = scmp.eq.s32.totalorder %s2438_s14, 1 }
 0x14b   : > { %p57_p1 = scmp.ne.s32.totalorder %s3527_s30, %s4336_s21  ;;  %p354_p3 = scmp.eq.s32.totalorder %s4337_s1, 1 }
 0x14c   : > { %s3964_s20 = scalar_select %p42_p13, %s3531_s15, %s44_s27  }
 0x14d   : > { %p53_p2 = por %p52_p0, %p51_p8  ;;  %p4338_p5 = scmp.eq.s32.totalorder %s4337_s1, 0 }
 0x14e   : > { %p3972_p6 = por %p354_p3, %p51_p8  ;;  %p2927_p10 = scmp.lt.s32.totalorder %s3535_s16, 2 }
 0x14f   : > { %p3968_p7 = por %p4338_p5, %p57_p1  ;;  %s535_s29 = sand.u32 1, %s3531_s15  }
 0x150   : > { %s4340_s28 = scalar_select %p3972_p6, 1, 0 }
 0x151   : > { %p3978_p11 = por %p360_p9, %p57_p1  ;;  %s2454_s26 = sshll.u32 %s535_s29, 3 }
 0x152   : > { %s2455_s22 = sshll.u32 %s3535_s16, 7  ;;  %s4342_s19 = sld [smem:[#allocation38_spill]] }
 0x153   : > { %s4341_s3 = scalar_select %p3978_p11, 1, 0 }
 0x154   : > { %s539_s21 = scalar_lea.vmem [#allocation2], %s2454_s26  ;;  %p3988_p12 = pnand %p2927_p10, %p53_p2 }
 0x155   : > { %s546_s1 = sshll.u32 %s539_s21, 4  ;;  %s536_s27 = scalar_lea.sflag [#allocation3], %s535_s29  ;;  %s3992_s1 = int_to_ptr.vmem [resolvable:$true] %s546_s1 }
 0x156   : > { %p3413_p8 = pneg %p3988_p12 }
 0x158   : > { %s3986_s18 = scalar_lea.hbm %s4342_s19, %s2455_s22  ;;  %s3416_s17 = scalar_lea.hbm %s4342_s19, 256 }
 0x159   : > { %s3411_s25 = scalar_lea.hbm %s3986_s18, 128  ;;  %p3417_p1 = scmp.lt.u32.totalorder %s3986_s18, %s4342_s19 }
 0x15a   : > { %p3412_p4 = scmp.ne.s32.totalorder %s3986_s18, %s3411_s25  ;;  %p3418_p3 = scmp.lt.u32.totalorder %s3416_s17, %s3411_s25 }
 0x15b   : > { %p3420_p5 = scmp.lt.u32.totalorder %s3411_s25, %s3986_s18 }
 0x15c   : > { %p3414_p13 = pnand %p3413_p8, %p3412_p4  ;;  %p3419_p2 = por %p3418_p3, %p3417_p1 }
 0x15e   : > { %p3415_p0 = pneg %p3414_p13  ;;  %p3421_p9 = por %p3420_p5, %p3419_p2 }
 0x160   : > { %p3422_p10 = pnand %p3421_p9, %p3415_p0 }
 0x162   : > { %3425 = shalt.err (!%p3422_p10)
}
 0x163   : > { %s3426_s29 = scalar_lea.vmem %s3992_s1, 128  ;;  %s3552_s22 = smov [#allocation2]  }
 0x164   : > { %p3427_p4 = scmp.ne.s32.totalorder %s3992_s1, %s3426_s29  ;;  %s3431_s26 = sshll.u32 %s3552_s22, 4  ;;  %s3432_s26 = int_to_ptr.vmem [resolvable:$false] %s3431_s26 }
 0x165   : > { %s3433_s0 = scalar_lea.vmem %s3432_s26, 256  ;;  %p3434_p6 = scmp.lt.s32.totalorder %s3992_s1, %s3432_s26 }
 0x166   : > { %p3429_p13 = pnand %p3427_p4, %p3413_p8  ;;  %p3435_p1 = scmp.lt.s32.totalorder %s3433_s0, %s3426_s29 }
 0x168   : > { %p3430_p11 = pneg %p3429_p13  ;;  %p3436_p3 = por %p3435_p1, %p3434_p6 }
 0x16a   : > { %p3437_p2 = pnand %p3436_p3, %p3430_p11 }
 0x16c   : > { %3440 = shalt.err (!%p3437_p2)
}
 0x16d   : > { %2909 = dma.hbm_to_vmem [thread:$0]  (!%p3988_p12), %s3986_s18, 128, %s3992_s1, %s536_s27  }
 0x16e   : > { %s4344_s25 = sld [smem:[#allocation37_spill]] }
 0x174   : > { %p4345_p0 = scmp.ne.s32.totalorder %s4344_s25, 0 }
 0x175   : > { %s4022_s17 = sand.u32 (!%p4345_p0), 1, %s3527_s30  }
 0x176   : > { %555 = sbr.rel (%p4345_p0) target bundleno = 2723 (0xaa3), region = 76  ;;  %s2457_s21 = sshll.u32 (!%p4345_p0), %s4022_s17, 3 }
 0x177   : > { %s558_s29 = scalar_lea.sflag (!%p4345_p0), [#allocation3], %s4022_s17  ;;  %s561_s22 = scalar_lea.vmem (!%p4345_p0), [#allocation2], %s2457_s21 }
 0x17d   : > { %3486 = dma.done.wait (%p3968_p7), %s558_s29, 128  }
 0x17e   : > { %3488 = vsyncadd (%p3968_p7), %s558_s29, 4294967168  ;;  %s4346_s18 = sld [smem:[#allocation36_spill]] }
 0x184   : > { %p4347_p6 = scmp.eq.s32.totalorder %s4346_s18, 0 }
 0x186   : > { %3490 = dma.done.wait (%p4347_p6), [#allocation6], 32   ;;  %p4348_p11 = pmov %p4347_p6 }
 0x187   : > { %p4349_p12 = pmov %p4347_p6 }
 0x188   : > { %3492 = vsyncadd (%p4348_p11), [#allocation6], 4294967264 }
 0x189   : > { %3494 = dma.done.wait (%p4349_p12), [#allocation9], 2048   ;;  %p4350_p8 = pmov %p4347_p6 }
 0x18a   : > { %p4351_p5 = pmov %p4347_p6 }
 0x18b   : > { %3496 = vsyncadd (%p4350_p8), [#allocation9], 4294965248 }
 0x18c   : > { %3498 = dma.done.wait (%p4351_p5), [#allocation12], 1280   ;;  %p4352_p9 = pmov %p4351_p5 }
 0x18d   : > { %p4353_p7 = pmov %p4351_p5 }
 0x18e   : > { %3500 = vsyncadd (%p4352_p9), [#allocation12], 4294966016 }
 0x18f   : > { %3502 = dma.done.wait (%p4353_p7), [#allocation15], 32   ;;  %p4354_p10 = pmov %p4351_p5 }
 0x190   : > { %p4355_p4 = pmov %p4351_p5 }
 0x191   : > { %3504 = vsyncadd (%p4354_p10), [#allocation15], 4294967264 }
 0x192   : > { %3506 = dma.done.wait (%p4355_p4), [#allocation18], 272   ;;  %p4356_p13 = pmov %p4355_p4 }
 0x193   : > { %p4357_p1 = pmov %p4355_p4 }
 0x194   : > { %3508 = vsyncadd (%p4356_p13), [#allocation18], 4294967024 }
 0x195   : > { %3510 = dma.done.wait (%p4357_p1), [#allocation21], 1040   ;;  %p4358_p3 = pmov %p4357_p1 }
 0x196   : > { %p4359_p2 = pmov %p4357_p1 }
 0x197   : > { %3512 = vsyncadd (%p4358_p3), [#allocation21], 4294966256 }
 0x198   : > { %3514 = dma.done.wait (%p4359_p2), [#allocation24], 16   ;;  %p4360_p0 = pmov %p4357_p1 }
 0x199   : > { %vm662_vm0 = vcmask 261120   ;;  %v4060_v0 = vld [vmem:[%s561_s22] sm:$0xff]  ;;  %v2991_v7 = vld [vmem:[#allocation8] sm:$0xff]   ;;  %v3553_v9 = vmov 0.0   ;;  %vm3554_vm1 = vmmov 0   ;;  %vm1380_vm2 = vcmask 64512  }
 0x19a   : > { %3516 = vsyncadd (%p4360_p0), [#allocation24], 4294967280  ;;  %v663_v1 = vsel %vm662_vm0, %v4060_v0, 0.0  ;;  %v2992_v8 = vld [vmem:[#allocation8 + $0x30] sm:$0xff]   ;;  %2614 = vmatprep.subr.bf16.mxu0 %v3553_v9  ;;  %2638 = vmatprep.subr.bf16.mxu1 %v3553_v9  ;;  %v2993_v10 = vld [vmem:[#allocation8 + $0x8] sm:$0xff]   ;;  %vm1624_vm3 = vcmask 1043456  }
 0x19b   : > { %664 = vadd.xlane.f32.xlu0 %v663_v1  ;;  %2615 = vmatpush3.bf16.msra.mxu0 %v2991_v7  ;;  %v2994_v11 = vld [vmem:[#allocation8 + $0x38] sm:$0xff]   ;;  %v2995_v21 = vld [vmem:[#allocation8 + $0x10] sm:$0xff]   ;;  %v2999_v26 = vld [vmem:[#allocation8 + $0x20] sm:$0xff]   ;;  %s2539_s24 = sshll.u32 %s4346_s18, 7  ;;  %s657_s1 = scalar_lea.vmem [#allocation25], %s2457_s21 }
 0x19c   : > { %2639 = vmatpush3.bf16.msra.mxu1 %v2992_v8  ;;  %2616 = vmatprep.subr.bf16.mxu0 %v3553_v9  ;;  %v2472_v16 = vld [vmem:[#allocation5] ss:$0 sm:$0xff]  ;;  %v2473_v18 = vld [vmem:[#allocation7] ss:$0 sm:$0xff]  ;;  %v2996_v22 = vld [vmem:[#allocation10 + $0x10] sm:$0xff]   ;;  %s2244_s14 = sshll.u32 %s657_s1, 4  ;;  %s4255_s14 = int_to_ptr.vmem [resolvable:$true] %s2244_s14 }
 0x19d   : > { %2640 = vmatprep.subr.bf16.mxu1 %v3553_v9  ;;  %2618 = vmatprep.mubr.msk.bf16.mxu0 %vm3554_vm1, %v3553_v9  ;;  %v2997_v24 = vld [vmem:[#allocation8 + $0x18] sm:$0xff]   ;;  %v3000_v27 = vld [vmem:[#allocation10 + $0x30] sm:$0xff]   ;;  %v3001_v28 = vld [vmem:[#allocation8 + $0x28] sm:$0xff]   ;;  %s4361_s0 = sld [smem:[#allocation42_spill]]  ;;  %s2231_s21 = scalar_lea.sflag [#allocation4], %s4022_s17 }
 0x19e   : > { %2642 = vmatprep.mubr.msk.bf16.mxu1 %vm3554_vm1, %v3553_v9  ;;  %v2998_v25 = vld [vmem:[#allocation10 + $0x18] sm:$0xff]   ;;  %v3003_v30 = vld [vmem:[#allocation10] sm:$0xff]   ;;  %v3004_v31 = vld [vmem:[#allocation11 + $0x10] sm:$0xff]   ;;  %s3441_s29 = scalar_lea.vmem %s4255_s14, 128  ;;  %p4362_p11 = scmp.ne.s32.totalorder %s4340_s28, 0 }
 0x19f   : > { %2617 = vmatpush3.bf16.msra.mxu0 %v2993_v10  ;;  %v3002_v29 = vld [vmem:[#allocation10 + $0x38] sm:$0xff]   ;;  %v3005_v32 = vld [vmem:[#allocation10 + $0x8] sm:$0xff]   ;;  %v3007_v34 = vld [vmem:[#allocation10 + $0x20] sm:$0xff]   ;;  %p3442_p6 = scmp.ne.s32.totalorder %s4255_s14, %s3441_s29  ;;  %s3555_s22 = smov [#allocation25]  }
 0x1a0   : > { %2641 = vmatpush3.bf16.msra.mxu1 %v2994_v11  ;;  %2622 = vmatprep.subr.bf16.mxu0 %v3553_v9  ;;  %v3006_v33 = vld [vmem:[#allocation11 + $0x18] sm:$0xff]   ;;  %v3008_v35 = vld [vmem:[#allocation11 + $0x30] sm:$0xff]   ;;  %v3009_v36 = vld [vmem:[#allocation10 + $0x28] sm:$0xff]   ;;  %s3445_s18 = sshll.u32 %s3555_s22, 4  ;;  %s3446_s18 = int_to_ptr.vmem [resolvable:$false] %s3445_s18 }
 0x1a1   : > { %2654 = vmatprep.subr.bf16.mxu1 %v3553_v9  ;;  %v3010_v37 = vld [vmem:[#allocation11 + $0x38] sm:$0xff]   ;;  %v3011_v38 = vld [vmem:[#allocation11] sm:$0xff]   ;;  %v3012_v39 = vld [vmem:[#allocation11 + $0x8] sm:$0xff]   ;;  %p3443_p12 = pnand %p3442_p6, %p4362_p11  ;;  %s3447_s2 = scalar_lea.vmem %s3446_s18, 256 }
 0x1a2   : > { %v3013_v40 = vld [vmem:[#allocation11 + $0x20] sm:$0xff]   ;;  %v3014_v41 = vld [vmem:[#allocation11 + $0x28] sm:$0xff]   ;;  %p3448_p5 = scmp.lt.s32.totalorder %s4255_s14, %s3446_s18  ;;  %p3449_p9 = scmp.lt.s32.totalorder %s3447_s2, %s3441_s29 }
 0x1a3   : > { %s4253_s25 = scalar_lea.hbm %s4361_s0, %s2539_s24  ;;  %p3444_p8 = pneg %p3443_p12 }
 0x1a4   : > { %p3450_p7 = por %p3449_p9, %p3448_p5 }
 0x1a6   : > { %p3451_p10 = pnand %p3450_p7, %p3444_p8 }
 0x228   : > { %v665_v2 = vpop.xlane.xlu0 %664 }
 0x229   : > { %v667_v3 = vmul.f32 0.03125, %v665_v2 }
 0x22b   : > { %v668_v4 = vsub.f32 %v4060_v0, %v667_v3 }
 0x22d   : > { %v669_v5 = vmul.f32 %v668_v4, %v668_v4 }
 0x22f   : > { %v670_v6 = vsel %vm662_vm0, %v669_v5, 0.0 }
 0x230   : > { %671 = vadd.xlane.f32.xlu0 %v670_v6 }
 0x2bd   : > { %v672_v12 = vpop.xlane.xlu0 %671 }
 0x2be   : > { %v673_v13 = vmul.f32 0.03125, %v672_v12 }
 0x2c0   : > { %v674_v14 = vadd.f32 1e-05, %v673_v13 }
 0x2c2   : > { %3025 = vrsqrt.f32 %v674_v14 }
 0x2cc   : > { %v3026_v15 = vpop.eup %3025 }
 0x2cd   : > { %v676_v17 = vmul.f32 %v3026_v15, %v668_v4 }
 0x2cf   : > { %v683_v19 = vmul.f32 %v2472_v16, %v676_v17 }
 0x2d1   : > { %v690_v20 = vadd.f32 %v2473_v18, %v683_v19 }
 0x2d3   : > { %v4076_v23 = vpack.c.bf16 %v690_v20, %v690_v20 }
 0x2d5   : > { %2619 = vmatmul.mubr.msk.bf16.vlgmr.msra.gmra.mrb[0].mxu0 %vm662_vm0, %v4076_v23  ;;  %2643 = vmatmul.mubr.msk.bf16.vlgmr.msra.gmra.mrb[0].mxu1 %vm662_vm0, %v4076_v23 }
 0x2d6   : > { %2623 = vmatpush3.bf16.msra.mxu0 %v2995_v21  ;;  %2655 = vmatpush3.bf16.msra.mxu1 %v2996_v22 }
 0x2d7   : > { %2624 = vmatprep.subr.bf16.mxu0 %v3553_v9  ;;  %2656 = vmatprep.subr.bf16.mxu1 %v3553_v9 }
 0x2d8   : > { %2626 = vmatprep.mubr.msk.bf16.mxu0 %vm3554_vm1, %v3553_v9  ;;  %2658 = vmatprep.mubr.msk.bf16.mxu1 %vm3554_vm1, %v3553_v9 }
 0x2da   : > { %2625 = vmatpush3.bf16.msra.mxu0 %v2997_v24  ;;  %2657 = vmatpush3.bf16.msra.mxu1 %v2998_v25 }
 0x2db   : > { %2630 = vmatprep.subr.bf16.mxu0 %v3553_v9  ;;  %2670 = vmatprep.subr.bf16.mxu1 %v3553_v9 }
 0x2dd   : > { %2627 = vmatmul.mubr.msk.bf16.vlgmr.msra.gmra.mrb[4].mxu0 %vm662_vm0, %v4076_v23  ;;  %2659 = vmatmul.mubr.msk.bf16.vlgmr.msra.gmra.mrb[4].mxu1 %vm662_vm0, %v4076_v23 }
 0x2de   : > { %2631 = vmatpush3.bf16.msra.mxu0 %v2999_v26  ;;  %2671 = vmatpush3.bf16.msra.mxu1 %v3000_v27 }
 0x2df   : > { %2632 = vmatprep.subr.bf16.mxu0 %v3553_v9  ;;  %2672 = vmatprep.subr.bf16.mxu1 %v3553_v9 }
 0x2e0   : > { %2634 = vmatprep.mubr.msk.bf16.mxu0 %vm3554_vm1, %v3553_v9  ;;  %2674 = vmatprep.mubr.msk.bf16.mxu1 %vm3554_vm1, %v3553_v9 }
 0x2e2   : > { %2633 = vmatpush3.bf16.msra.mxu0 %v3001_v28  ;;  %2673 = vmatpush3.bf16.msra.mxu1 %v3002_v29 }
 0x2e3   : > { %2646 = vmatprep.subr.bf16.mxu0 %v3553_v9  ;;  %2686 = vmatprep.subr.bf16.mxu1 %v3553_v9 }
 0x2e5   : > { %2635 = vmatmul.mubr.msk.bf16.vlgmr.msra.gmra.mrb[8].mxu0 %vm662_vm0, %v4076_v23  ;;  %2675 = vmatmul.mubr.msk.bf16.vlgmr.msra.gmra.mrb[8].mxu1 %vm662_vm0, %v4076_v23 }
 0x2e6   : > { %2647 = vmatpush3.bf16.msra.mxu0 %v3003_v30  ;;  %2687 = vmatpush3.bf16.msra.mxu1 %v3004_v31 }
 0x2e7   : > { %2648 = vmatprep.subr.bf16.mxu0 %v3553_v9  ;;  %2688 = vmatprep.subr.bf16.mxu1 %v3553_v9 }
 0x2e8   : > { %2650 = vmatprep.mubr.msk.bf16.mxu0 %vm3554_vm1, %v3553_v9  ;;  %2690 = vmatprep.mubr.msk.bf16.mxu1 %vm3554_vm1, %v3553_v9 }
 0x2ea   : > { %2649 = vmatpush3.bf16.msra.mxu0 %v3005_v32  ;;  %2689 = vmatpush3.bf16.msra.mxu1 %v3006_v33 }
 0x2eb   : > { %2662 = vmatprep.subr.bf16.mxu0 %v3553_v9  ;;  %2702 = vmatprep.subr.bf16.mxu1 %v3553_v9 }
 0x2ed   : > { %2651 = vmatmul.mubr.msk.bf16.vlgmr.msra.gmra.mrb[12].mxu0 %vm662_vm0, %v4076_v23  ;;  %2691 = vmatmul.mubr.msk.bf16.vlgmr.msra.gmra.mrb[12].mxu1 %vm662_vm0, %v4076_v23 }
 0x2ee   : > { %2663 = vmatpush3.bf16.msra.mxu0 %v3007_v34  ;;  %2703 = vmatpush3.bf16.msra.mxu1 %v3008_v35 }
 0x2ef   : > { %2664 = vmatprep.subr.bf16.mxu0 %v3553_v9  ;;  %2704 = vmatprep.subr.bf16.mxu1 %v3553_v9 }
 0x2f0   : > { %2666 = vmatprep.mubr.msk.bf16.mxu0 %vm3554_vm1, %v3553_v9  ;;  %2706 = vmatprep.mubr.msk.bf16.mxu1 %vm3554_vm1, %v3553_v9 }
 0x2f2   : > { %2665 = vmatpush3.bf16.msra.mxu0 %v3009_v36  ;;  %2705 = vmatpush3.bf16.msra.mxu1 %v3010_v37 }
 0x2f3   : > { %2678 = vmatprep.subr.bf16.mxu0 %v3553_v9  ;;  %2716 = vmatprep.subr.bf16.mxu1 %v3553_v9 }
 0x2f5   : > { %2667 = vmatmul.mubr.msk.bf16.vlgmr.msra.gmra.mrb[16].mxu0 %vm662_vm0, %v4076_v23  ;;  %2707 = vmatmul.mubr.msk.bf16.vlgmr.msra.gmra.mrb[16].mxu1 %vm662_vm0, %v4076_v23 }
 0x2f6   : > { %2679 = vmatpush3.bf16.msra.mxu0 %v3011_v38  ;;  %2682 = vmatprep.mubr.msk.bf16.mxu0 %vm3554_vm1, %v3553_v9 }
 0x2f7   : > { %2680 = vmatprep.subr.bf16.mxu0 %v3553_v9  ;;  %2718 = vmatprep.mubr.msk.bf16.mxu1 %vm3554_vm1, %v3553_v9 }
 0x2fa   : > { %2681 = vmatpush3.bf16.msra.mxu0 %v3012_v39 }
 0x2fb   : > { %2694 = vmatprep.subr.bf16.mxu0 %v3553_v9 }
 0x2fd   : > { %2683 = vmatmul.mubr.msk.bf16.vlgmr.msra.gmra.mrb[20].mxu0 %vm662_vm0, %v4076_v23 }
 0x2fe   : > { %2695 = vmatpush3.bf16.msra.mxu0 %v3013_v40  ;;  %2698 = vmatprep.mubr.msk.bf16.mxu0 %vm3554_vm1, %v3553_v9 }
 0x2ff   : > { %2696 = vmatprep.subr.bf16.mxu0 %v3553_v9 }
 0x302   : > { %2697 = vmatpush3.bf16.msra.mxu0 %v3014_v41 }
 0x303   : > { %2710 = vmatprep.subr.bf16.mxu0 %v3553_v9 }
 0x305   : > { %2699 = vmatmul.mubr.msk.bf16.vlgmr.msra.gmra.mrb[24].mxu0 %vm662_vm0, %v4076_v23 }
 0x306   : > { %2712 = vmatprep.mubr.msk.bf16.mxu0 %vm3554_vm1, %v3553_v9 }
 0x3a8   : > { %v4146_v42 = vpop.f32.mrb[0].mxu0  ;;  %v913_v43 = vpop.f32.mrb[0].mxu1 }
 0x3a9   : > { %v2620_v44 = vpop.f32.mrb[1].mxu0  ;;  %v2644_v45 = vpop.f32.mrb[1].mxu1  ;;  %v1375_v11 = vpack.c.bf16 %v913_v43, %v913_v43  ;;  %v1372_v24 = vpack.c.bf16 %v4146_v42, %v4146_v42 }
 0x3aa   : > { %v760_v46 = vpop.f32.mrb[2].mxu0  ;;  %v916_v47 = vpop.f32.mrb[2].mxu1 }
 0x3ab   : > { %v2621_v48 = vpop.f32.mrb[3].mxu0  ;;  %v2645_v49 = vpop.f32.mrb[3].mxu1 }
 0x3ac   : > { %v1367_v48 = vlaneseq }
 0x3b0   : > { %v809_v50 = vpop.f32.mrb[4].mxu0  ;;  %v1033_v51 = vpop.f32.mrb[4].mxu1 }
 0x3b1   : > { %v1377_v52 = vpack.c.bf16 %v1033_v51, %v1033_v51  ;;  %v2628_v53 = vpop.f32.mrb[5].mxu0  ;;  %v2660_v54 = vpop.f32.mrb[5].mxu1  ;;  %v1373_v62 = vpack.c.bf16 %v809_v50, %v809_v50 }
 0x3b2   : > { %v812_v55 = vpop.f32.mrb[6].mxu0  ;;  %v1036_v56 = vpop.f32.mrb[6].mxu1  ;;  %v1368_v53 = vshrl.u32 %v1367_v48, 7  ;;  %v1370_v54 = vand.u32 127, %v1367_v48 }
 0x3b3   : > { %v1431_v57 = vsel %vm1380_vm2, %v1377_v52, 0  ;;  %v2629_v58 = vpop.f32.mrb[7].mxu0  ;;  %v2661_v59 = vpop.f32.mrb[7].mxu1 }
 0x3b4   : > { %2717 = vmatpush3.bf16.xpose.msra.mxu1 %v1431_v57  ;;  %vm1371_vm4 = vcmp.gt.s32.totalorder %v1370_v54, %v1368_v53  ;;  %v1812_v53 = vld [vmem:[#allocation13 + $0x8] sm:$0xf] }
 0x3b5   : > { %2728 = vmatprep.subr.bf16.mxu1 %v3553_v9 }
 0x3b8   : > { %v861_v60 = vpop.f32.mrb[8].mxu0  ;;  %v1137_v61 = vpop.f32.mrb[8].mxu1 }
 0x3b9   : > { %v1379_v63 = vpack.c.bf16 %v1137_v61, %v1137_v61  ;;  %v2636_v1 = vpop.f32.mrb[9].mxu0  ;;  %v2676_v2 = vpop.f32.mrb[9].mxu1  ;;  %v1374_v34 = vpack.c.bf16 %v861_v60, %v861_v60 }
 0x3ba   : > { %v864_v3 = vpop.f32.mrb[10].mxu0  ;;  %v1140_v4 = vpop.f32.mrb[10].mxu1 }
 0x3bb   : > { %v1523_v5 = vsel %vm1380_vm2, %v1379_v63, 0  ;;  %v2637_v6 = vpop.f32.mrb[11].mxu0  ;;  %v2677_v7 = vpop.f32.mrb[11].mxu1  ;;  %2719 = vmatmul.mubr.msk.bf16.vlgmr.msra.gmra.mrb[20].mxu1 %vm1380_vm2, %v1373_v62 }
 0x3bc   : > { %2729 = vmatpush3.bf16.xpose.msra.mxu1 %v1523_v5  ;;  %2730 = vmatprep.mubr.msk.bf16.mxu1 %vm3554_vm1, %v3553_v9 }
 0x3bd   : > { %2740 = vmatprep.subr.bf16.mxu1 %v3553_v9 }
 0x3c0   : > { %v981_v8 = vpop.f32.mrb[12].mxu0  ;;  %v1257_v10 = vpop.f32.mrb[12].mxu1 }
 0x3c1   : > { %v1376_v12 = vpack.c.bf16 %v981_v8, %v981_v8  ;;  %v1618_v13 = vpack.c.bf16 %v1257_v10, %v1257_v10  ;;  %v2652_v14 = vpop.f32.mrb[13].mxu0  ;;  %v2692_v15 = vpop.f32.mrb[13].mxu1 }
 0x3c2   : > { %v984_v16 = vpop.f32.mrb[14].mxu0  ;;  %v1260_v17 = vpop.f32.mrb[14].mxu1 }
 0x3c3   : > { %v1385_v18 = vsel %vm1380_vm2, %v1376_v12, 0  ;;  %v1672_v19 = vsel %vm1624_vm3, %v1618_v13, 0  ;;  %v2653_v20 = vpop.f32.mrb[15].mxu0  ;;  %v2693_v21 = vpop.f32.mrb[15].mxu1  ;;  %2731 = vmatmul.mubr.msk.bf16.vlgmr.msra.gmra.mrb[24].mxu1 %vm1380_vm2, %v1375_v11 }
 0x3c4   : > { %2711 = vmatpush3.bf16.xpose.msra.mxu0 %v1385_v18  ;;  %2741 = vmatpush3.bf16.msra.mxu1 %v1672_v19 }
 0x3c5   : > { %2722 = vmatprep.subr.bf16.mxu0 %v3553_v9  ;;  %2742 = vmatprep.mubr.msk.bf16.mxu1 %vm3554_vm1, %v3553_v9 }
 0x3c6   : > { %2752 = vmatprep.subr.bf16.mxu1 %v3553_v9 }
 0x3c8   : > { %v1085_v22 = vpop.f32.mrb[16].mxu0  ;;  %v4162_v23 = vpop.f32.mrb[16].mxu1 }
 0x3c9   : > { %v1378_v25 = vpack.c.bf16 %v1085_v22, %v1085_v22  ;;  %v2668_v26 = vpop.f32.mrb[17].mxu0  ;;  %v2708_v27 = vpop.f32.mrb[17].mxu1 }
 0x3ca   : > { %v1088_v28 = vpop.f32.mrb[18].mxu0  ;;  %v1364_v29 = vpop.f32.mrb[18].mxu1 }
 0x3cb   : > { %v1477_v30 = vsel %vm1380_vm2, %v1378_v25, 0  ;;  %v2669_v31 = vpop.f32.mrb[19].mxu0  ;;  %v2709_v32 = vpop.f32.mrb[19].mxu1  ;;  %2713 = vmatmul.mubr.msk.bf16.vlgmr.msra.gmra.mrb[28].mxu0 %vm1380_vm2, %v1372_v24 }
 0x3cc   : > { %2723 = vmatpush3.bf16.xpose.msra.mxu0 %v1477_v30  ;;  %2724 = vmatprep.mubr.msk.bf16.mxu0 %vm3554_vm1, %v3553_v9 }
 0x3cd   : > { %2734 = vmatprep.subr.bf16.mxu0 %v3553_v9 }
 0x3d0   : > { %v1205_v33 = vpop.f32.mrb[20].mxu0 }
 0x3d1   : > { %v1617_v35 = vpack.c.bf16 %v1205_v33, %v1205_v33  ;;  %v2684_v36 = vpop.f32.mrb[21].mxu0 }
 0x3d2   : > { %v1208_v37 = vpop.f32.mrb[22].mxu0 }
 0x3d3   : > { %v1626_v38 = vsel %vm1624_vm3, %v1617_v35, 0  ;;  %v2685_v39 = vpop.f32.mrb[23].mxu0  ;;  %2725 = vmatmul.mubr.msk.bf16.vlgmr.msra.gmra.mrb[32].mxu0 %vm1380_vm2, %v1374_v34 }
 0x3d4   : > { %2735 = vmatpush3.bf16.msra.mxu0 %v1626_v38  ;;  %2736 = vmatprep.mubr.msk.bf16.mxu0 %vm3554_vm1, %v3553_v9  ;;  %v1620_v39 = vpack.c.bf16 %v4162_v23, %v4162_v23 }
 0x3d5   : > { %2746 = vmatprep.subr.bf16.mxu0 %v3553_v9 }
 0x3d8   : > { %v4176_v40 = vpop.f32.mrb[24].mxu0 }
 0x3d9   : > { %v2700_v41 = vpop.f32.mrb[25].mxu0  ;;  %v1619_v35 = vpack.c.bf16 %v4176_v40, %v4176_v40 }
 0x3da   : > { %v1312_v42 = vpop.f32.mrb[26].mxu0 }
 0x3db   : > { %v2701_v43 = vpop.f32.mrb[27].mxu0  ;;  %v1718_v41 = vsel %vm1624_vm3, %v1619_v35, 0  ;;  %v2522_v35 = vld [vmem:[#allocation14] ss:$0 sm:$0xff] }
 0x48e   : > { %v1467_v44 = vpop.f32.mrb[20].mxu1 }
 0x48f   : > { %v2720_v45 = vpop.f32.mrb[21].mxu1  ;;  %v1566_v60 = vsel %vm1371_vm4, -1e+30, %v1467_v44 }
 0x490   : > { %v1470_v46 = vpop.f32.mrb[22].mxu1  ;;  %v1572_v62 = vsel %vm1380_vm2, %v1566_v60, -inf  ;;  %v1764_v45 = vsel %vm1624_vm3, %v1620_v39, 0 }
 0x491   : > { %v2721_v47 = vpop.f32.mrb[23].mxu1  ;;  %v1810_v46 = vld [vmem:[#allocation13] sm:$0xf] }
 0x496   : > { %v1559_v49 = vpop.f32.mrb[24].mxu1 }
 0x497   : > { %v2732_v50 = vpop.f32.mrb[25].mxu1  ;;  %v1568_v63 = vsel %vm1371_vm4, -1e+30, %v1559_v49  ;;  %v1818_v49 = vsel %vm1624_vm3, %v1810_v46, 0 }
 0x498   : > { %v1562_v51 = vpop.f32.mrb[26].mxu1  ;;  %v1578_v5 = vsel %vm1380_vm2, %v1568_v63, -inf }
 0x499   : > { %v2733_v52 = vpop.f32.mrb[27].mxu1  ;;  %v1811_v51 = vld [vmem:[#allocation13 + $0x4] sm:$0xf] }
 0x49a   : > { %v1864_v52 = vsel %vm1624_vm3, %v1811_v51, 0 }
 0x49e   : > { %v1421_v55 = vpop.f32.mrb[28].mxu0 }
 0x49f   : > { %v1565_v56 = vsel %vm1371_vm4, -1e+30, %v1421_v55  ;;  %v2714_v57 = vpop.f32.mrb[29].mxu0 }
 0x4a0   : > { %v1424_v58 = vpop.f32.mrb[30].mxu0  ;;  %v1569_v59 = vsel %vm1380_vm2, %v1565_v56, -inf  ;;  %v1910_v57 = vsel %vm1624_vm3, %v1812_v53, 0 }
 0x4a1   : > { %1570 = vmax.xlane.f32.xlu1 %v1569_v59  ;;  %v2715_v61 = vpop.f32.mrb[31].mxu0  ;;  %v1813_v59 = vld [vmem:[#allocation13 + $0xc] sm:$0xf] }
 0x4a5   : > { %1573 = vmax.xlane.f32.xlu1 %v1572_v62 }
 0x4a6   : > { %v1513_v1 = vpop.f32.mrb[32].mxu0 }
 0x4a7   : > { %v1567_v2 = vsel %vm1371_vm4, -1e+30, %v1513_v1  ;;  %v2726_v3 = vpop.f32.mrb[33].mxu0  ;;  %v1956_v1 = vsel %vm1624_vm3, %v1813_v59, 0 }
 0x4a8   : > { %v1516_v4 = vpop.f32.mrb[34].mxu0  ;;  %v1575_v6 = vsel %vm1380_vm2, %v1567_v2, -inf }
 0x4a9   : > { %1579 = vmax.xlane.f32.xlu1 %v1578_v5  ;;  %1576 = vmax.xlane.f32.xlu0 %v1575_v6  ;;  %v2727_v7 = vpop.f32.mrb[35].mxu0 }
 0x52e   : > { %v1571_v8 = vpop.xlane.xlu1 %1570 }
 0x52f   : > { %v1581_v10 = vsub.f32 %v1565_v56, %v1571_v8 }
 0x531   : > { %v1585_v11 = vmul.f32 1.442695, %v1581_v10 }
 0x532   : > { %v1574_v12 = vpop.xlane.xlu1 %1573 }
 0x533   : > { %3027 = vpow2.f32 %v1585_v11  ;;  %v1582_v13 = vsub.f32 %v1566_v60, %v1574_v12 }
 0x535   : > { %v1587_v14 = vmul.f32 1.442695, %v1582_v13 }
 0x536   : > { %v1580_v15 = vpop.xlane.xlu1 %1579  ;;  %v1577_v16 = vpop.xlane.xlu0 %1576 }
 0x537   : > { %3029 = vpow2.f32 %v1587_v14  ;;  %v1584_v17 = vsub.f32 %v1568_v63, %v1580_v15  ;;  %v1583_v18 = vsub.f32 %v1567_v2, %v1577_v16 }
 0x539   : > { %v1591_v19 = vmul.f32 1.442695, %v1584_v17  ;;  %v1589_v20 = vmul.f32 1.442695, %v1583_v18 }
 0x53b   : > { %3031 = vpow2.f32 %v1591_v19 }
 0x53c   : > { %3033 = vpow2.f32 %v1589_v20 }
 0x53d   : > { %v3028_v21 = vpop.eup %3027 }
 0x53e   : > { %v1593_v22 = vsel %vm1380_vm2, %v3028_v21, 0.0 }
 0x53f   : > { %1594 = vadd.xlane.f32.xlu0 %v1593_v22 }
 0x541   : > { %v3030_v24 = vpop.eup %3029 }
 0x542   : > { %v1596_v25 = vsel %vm1380_vm2, %v3030_v24, 0.0 }
 0x543   : > { %1597 = vadd.xlane.f32.xlu1 %v1596_v25 }
 0x545   : > { %v3032_v26 = vpop.eup %3031 }
 0x546   : > { %v3034_v27 = vpop.eup %3033  ;;  %v1602_v28 = vsel %vm1380_vm2, %v3032_v26, 0.0 }
 0x547   : > { %1603 = vadd.xlane.f32.xlu1 %v1602_v28  ;;  %v1599_v29 = vsel %vm1380_vm2, %v3034_v27, 0.0 }
 0x548   : > { %1600 = vadd.xlane.f32.xlu0 %v1599_v29 }
 0x5cc   : > { %v1595_v30 = vpop.xlane.xlu0 %1594 }
 0x5cd   : > { %3035 = vrcp.f32 %v1595_v30 }
 0x5d0   : > { %v1598_v31 = vpop.xlane.xlu1 %1597 }
 0x5d1   : > { %3037 = vrcp.f32 %v1598_v31 }
 0x5d4   : > { %v1604_v32 = vpop.xlane.xlu1 %1603 }
 0x5d5   : > { %3039 = vrcp.f32 %v1604_v32  ;;  %v1601_v33 = vpop.xlane.xlu0 %1600 }
 0x5d6   : > { %3041 = vrcp.f32 %v1601_v33 }
 0x5d7   : > { %v3036_v34 = vpop.eup %3035 }
 0x5d8   : > { %v1609_v36 = vmul.f32 %v3036_v34, %v3028_v21 }
 0x5da   : > { %v1613_v37 = vpack.c.bf16 %v1609_v36, %v1609_v36 }
 0x5db   : > { %v3038_v38 = vpop.eup %3037 }
 0x5dc   : > { %v1610_v42 = vmul.f32 %v3038_v38, %v3030_v24  ;;  %2737 = vmatmul.mubr.msk.bf16.vlgmr.msra.gmra.mrb[36].mxu0 %vm1380_vm2, %v1613_v37 }
 0x5dd   : > { %2747 = vmatpush3.bf16.msra.mxu0 %v1718_v41  ;;  %2748 = vmatprep.mubr.msk.bf16.mxu0 %vm3554_vm1, %v3553_v9 }
 0x5de   : > { %v1614_v43 = vpack.c.bf16 %v1610_v42, %v1610_v42  ;;  %2758 = vmatprep.subr.bf16.mxu0 %v3553_v9 }
 0x5df   : > { %v3040_v44 = vpop.eup %3039 }
 0x5e0   : > { %v3042_v40 = vpop.eup %3041  ;;  %2743 = vmatmul.mubr.msk.bf16.vlgmr.msra.gmra.mrb[28].mxu1 %vm1380_vm2, %v1614_v43  ;;  %v1612_v47 = vmul.f32 %v3040_v44, %v3032_v26 }
 0x5e1   : > { %v1611_v23 = vmul.f32 %v3042_v40, %v3034_v27  ;;  %2753 = vmatpush3.bf16.msra.mxu1 %v1764_v45  ;;  %2754 = vmatprep.mubr.msk.bf16.mxu1 %vm3554_vm1, %v3553_v9 }
 0x5e2   : > { %2764 = vmatprep.subr.bf16.mxu1 %v3553_v9  ;;  %v1616_v50 = vpack.c.bf16 %v1612_v47, %v1612_v47  ;;  %v3015_v47 = vld [vmem:[#allocation19] sm:$0xff]  }
 0x5e3   : > { %v1615_v48 = vpack.c.bf16 %v1611_v23, %v1611_v23 }
 0x5e5   : > { %2749 = vmatmul.mubr.msk.bf16.vlgmr.msra.gmra.mrb[40].mxu0 %vm1380_vm2, %v1615_v48  ;;  %v3016_v48 = vld [vmem:[#allocation19 + $0x8] sm:$0xff]  }
 0x5e6   : > { %2759 = vmatpush3.bf16.msra.mxu0 %v1818_v49  ;;  %2760 = vmatprep.mubr.msk.bf16.mxu0 %vm3554_vm1, %v3553_v9  ;;  %v3018_v49 = vld [vmem:[#allocation22 + $0x8] sm:$0xff]  }
 0x5e7   : > { %2770 = vmatprep.subr.bf16.mxu0 %v3553_v9 }
 0x5e8   : > { %2755 = vmatmul.mubr.msk.bf16.vlgmr.msra.gmra.mrb[32].mxu1 %vm1380_vm2, %v1616_v50  ;;  %v3019_v50 = vld [vmem:[#allocation22 + $0x10] sm:$0xff]  }
 0x5e9   : > { %2766 = vmatprep.mubr.msk.bf16.mxu1 %vm3554_vm1, %v3553_v9  ;;  %2765 = vmatpush3.bf16.msra.mxu1 %v1864_v52 }
 0x5ea   : > { %2776 = vmatprep.subr.bf16.mxu1 %v3553_v9 }
 0x6af   : > { %v1662_v54 = vpop.f32.mrb[36].mxu0 }
 0x6b0   : > { %v1806_v55 = vpack.c.bf16 %v1662_v54, %v1662_v54  ;;  %v2738_v56 = vpop.f32.mrb[37].mxu0 }
 0x6b1   : > { %v1665_v58 = vpop.f32.mrb[38].mxu0 }
 0x6b2   : > { %v2739_v60 = vpop.f32.mrb[39].mxu0  ;;  %2761 = vmatmul.mubr.msk.bf16.vlgmr.msra.gmra.mrb[44].mxu0 %vm1380_vm2, %v1806_v55  ;;  %v2523_v55 = vld [vmem:[#allocation16] ss:$0 sm:$0xff] }
 0x6b3   : > { %v1708_v61 = vpop.f32.mrb[28].mxu1  ;;  %2771 = vmatpush3.bf16.msra.mxu0 %v1910_v57  ;;  %2772 = vmatprep.mubr.msk.bf16.mxu0 %vm3554_vm1, %v3553_v9  ;;  %v2524_v57 = vld [vmem:[#allocation17] ss:$0 sm:$0xff] }
 0x6b4   : > { %v1807_v62 = vpack.c.bf16 %v1708_v61, %v1708_v61  ;;  %v2744_v63 = vpop.f32.mrb[29].mxu1  ;;  %2782 = vmatprep.subr.bf16.mxu0 %v3553_v9  ;;  %v3020_v61 = vld [vmem:[#allocation22 + $0x18] sm:$0xff]  }
 0x6b5   : > { %v1711_v2 = vpop.f32.mrb[30].mxu1  ;;  %v3022_v63 = vld [vmem:[#allocation22 + $0x28] sm:$0xff]  }
 0x6b6   : > { %v2745_v3 = vpop.f32.mrb[31].mxu1  ;;  %2767 = vmatmul.mubr.msk.bf16.vlgmr.msra.gmra.mrb[36].mxu1 %vm1380_vm2, %v1807_v62  ;;  %v3021_v62 = vld [vmem:[#allocation22 + $0x20] sm:$0xff]   ;;  %v3024_v2 = vld [vmem:[#allocation22 + $0x38] sm:$0xff]  }
 0x6b7   : > { %2777 = vmatpush3.bf16.msra.mxu1 %v1956_v1  ;;  %2778 = vmatprep.mubr.msk.bf16.mxu1 %vm3554_vm1, %v3553_v9  ;;  %v3023_v1 = vld [vmem:[#allocation22 + $0x30] sm:$0xff]   ;;  %v2525_v3 = vld [vmem:[#allocation20] ss:$0 sm:$0xff] }
 0x6b8   : > { %v1754_v4 = vpop.f32.mrb[40].mxu0  ;;  %2790 = vmatprep.subr.bf16.mxu1 %v3553_v9 }
 0x6b9   : > { %v1808_v5 = vpack.c.bf16 %v1754_v4, %v1754_v4  ;;  %v2750_v6 = vpop.f32.mrb[41].mxu0 }
 0x6ba   : > { %v1757_v7 = vpop.f32.mrb[42].mxu0 }
 0x6bb   : > { %v2751_v8 = vpop.f32.mrb[43].mxu0  ;;  %2773 = vmatmul.mubr.msk.bf16.vlgmr.msra.gmra.mrb[48].mxu0 %vm1380_vm2, %v1808_v5  ;;  %v1800_v10 = vpop.f32.mrb[32].mxu1 }
 0x6bc   : > { %v1809_v11 = vpack.c.bf16 %v1800_v10, %v1800_v10  ;;  %v2756_v12 = vpop.f32.mrb[33].mxu1  ;;  %2786 = vmatprep.mubr.msk.bf16.mxu0 %vm3554_vm1, %v3553_v9  ;;  %2783 = vmatpush3.bf16.msra.mxu0 %v3015_v47 }
 0x6bd   : > { %v1803_v13 = vpop.f32.mrb[34].mxu1  ;;  %2784 = vmatprep.subr.bf16.mxu0 %v3553_v9 }
 0x6be   : > { %v2757_v14 = vpop.f32.mrb[35].mxu1  ;;  %2779 = vmatmul.mubr.msk.bf16.vlgmr.msra.gmra.mrb[40].mxu1 %vm1380_vm2, %v1809_v11 }
 0x6bf   : > { %2806 = vmatprep.mubr.msk.bf16.mxu1 %vm3554_vm1, %v3553_v9 }
 0x6c0   : > { %2785 = vmatpush3.bf16.msra.mxu0 %v3016_v48 }
 0x785   : > { %v1854_v15 = vpop.f32.mrb[44].mxu0 }
 0x786   : > { %v2762_v16 = vpop.f32.mrb[45].mxu0  ;;  %v1998_v20 = vsel %vm662_vm0, %v1854_v15, 0.0 }
 0x787   : > { %v1857_v17 = vpop.f32.mrb[46].mxu0 }
 0x788   : > { %v2763_v18 = vpop.f32.mrb[47].mxu0 }
 0x789   : > { %v1900_v19 = vpop.f32.mrb[36].mxu1 }
 0x78a   : > { %v1999_v21 = vsel %vm662_vm0, %v1900_v19, 0.0  ;;  %v2768_v22 = vpop.f32.mrb[37].mxu1 }
 0x78b   : > { %v2000_v24 = vadd.f32 %v1999_v21, %v1998_v20  ;;  %v1903_v25 = vpop.f32.mrb[38].mxu1 }
 0x78c   : > { %v2769_v26 = vpop.f32.mrb[39].mxu1 }
 0x78e   : > { %v1946_v27 = vpop.f32.mrb[48].mxu0 }
 0x78f   : > { %v2001_v28 = vsel %vm662_vm0, %v1946_v27, 0.0  ;;  %v2774_v29 = vpop.f32.mrb[49].mxu0 }
 0x790   : > { %v2002_v30 = vadd.f32 %v2001_v28, %v2000_v24  ;;  %v1949_v31 = vpop.f32.mrb[50].mxu0 }
 0x791   : > { %v2775_v32 = vpop.f32.mrb[51].mxu0  ;;  %v1992_v33 = vpop.f32.mrb[40].mxu1 }
 0x792   : > { %v2003_v34 = vsel %vm662_vm0, %v1992_v33, 0.0  ;;  %v2780_v36 = vpop.f32.mrb[41].mxu1 }
 0x793   : > { %v2004_v37 = vadd.f32 %v2003_v34, %v2002_v30  ;;  %v1995_v38 = vpop.f32.mrb[42].mxu1 }
 0x794   : > { %v2781_v39 = vpop.f32.mrb[43].mxu1 }
 0x795   : > { %v2012_v41 = vadd.f32 %v2522_v35, %v2004_v37 }
 0x797   : > { %v4231_v42 = vadd.f32 %v2012_v41, %v4060_v0  ;;  %v3017_v0 = vld [vmem:[#allocation22] sm:$0xff]  }
 0x798   : > { %2791 = vmatpush3.bf16.msra.mxu1 %v3017_v0 }
 0x799   : > { %v2016_v43 = vsel %vm662_vm0, %v4231_v42, 0.0  ;;  %2792 = vmatprep.subr.bf16.mxu1 %v3553_v9 }
 0x79a   : > { %2017 = vadd.xlane.f32.xlu0 %v2016_v43 }
 0x79c   : > { %2793 = vmatpush3.bf16.msra.mxu1 %v3018_v49 }
 0x79d   : > { %2794 = vmatprep.subr.bf16.mxu1 %v3553_v9 }
 0x7a0   : > { %2795 = vmatpush3.bf16.msra.mxu1 %v3019_v50 }
 0x7a1   : > { %2796 = vmatprep.subr.bf16.mxu1 %v3553_v9 }
 0x7a4   : > { %2797 = vmatpush3.bf16.msra.mxu1 %v3020_v61 }
 0x7a5   : > { %2798 = vmatprep.subr.bf16.mxu1 %v3553_v9 }
 0x7a8   : > { %2799 = vmatpush3.bf16.msra.mxu1 %v3021_v62 }
 0x7a9   : > { %2800 = vmatprep.subr.bf16.mxu1 %v3553_v9 }
 0x7ac   : > { %2801 = vmatpush3.bf16.msra.mxu1 %v3022_v63 }
 0x7ad   : > { %2802 = vmatprep.subr.bf16.mxu1 %v3553_v9 }
 0x7b0   : > { %2803 = vmatpush3.bf16.msra.mxu1 %v3023_v1 }
 0x7b1   : > { %2804 = vmatprep.subr.bf16.mxu1 %v3553_v9  ;;  %v2529_v9 = vld [vmem:[#allocation23] ss:$0 sm:$0xff] }
 0x7b4   : > { %2805 = vmatpush3.bf16.msra.mxu1 %v3024_v2 }
 0x827   : > { %v2018_v44 = vpop.xlane.xlu0 %2017 }
 0x828   : > { %v2019_v40 = vmul.f32 0.03125, %v2018_v44 }
 0x82a   : > { %v2020_v45 = vsub.f32 %v4231_v42, %v2019_v40 }
 0x82c   : > { %v2021_v46 = vmul.f32 %v2020_v45, %v2020_v45 }
 0x82e   : > { %v2022_v23 = vsel %vm662_vm0, %v2021_v46, 0.0 }
 0x82f   : > { %2023 = vadd.xlane.f32.xlu1 %v2022_v23 }
 0x8bc   : > { %v2024_v51 = vpop.xlane.xlu1 %2023 }
 0x8bd   : > { %v2025_v52 = vmul.f32 0.03125, %v2024_v51 }
 0x8bf   : > { %v2026_v53 = vadd.f32 1e-05, %v2025_v52 }
 0x8c1   : > { %3043 = vrsqrt.f32 %v2026_v53 }
 0x8cb   : > { %v3044_v54 = vpop.eup %3043 }
 0x8cc   : > { %v2028_v56 = vmul.f32 %v3044_v54, %v2020_v45 }
 0x8ce   : > { %v2035_v58 = vmul.f32 %v2523_v55, %v2028_v56 }
 0x8d0   : > { %v2042_v59 = vadd.f32 %v2524_v57, %v2035_v58 }
 0x8d2   : > { %v2043_v60 = vpack.c.bf16 %v2042_v59, %v2042_v59 }
 0x8d4   : > { %2787 = vmatmul.mubr.msk.bf16.vlgmr.msra.gmra.mrb[52].mxu0 %vm662_vm0, %v2043_v60 }
 0x9a7   : > { %v2104_v4 = vpop.f32.mrb[52].mxu0 }
 0x9a8   : > { %v2105_v5 = vadd.f32 %v2525_v3, %v2104_v4  ;;  %v2788_v6 = vpop.f32.mrb[53].mxu0 }
 0x9a9   : > { %v2107_v7 = vpop.f32.mrb[54].mxu0 }
 0x9aa   : > { %v2112_v8 = vmul.f32 0.70710677, %v2105_v5  ;;  %v2789_v10 = vpop.f32.mrb[55].mxu0  ;;  %v2110_v12 = vmul.f32 0.5, %v2105_v5 }
 0x9ac   : > { %3045 = verf.f32 %v2112_v8 }
 0x9b6   : > { %v3046_v11 = vpop.eup %3045 }
 0x9b7   : > { %v2114_v13 = vadd.f32 1.0, %v3046_v11 }
 0x9b9   : > { %v2115_v14 = vmul.f32 %v2114_v13, %v2110_v12 }
 0x9bb   : > { %v2116_v15 = vpack.c.bf16 %v2115_v14, %v2115_v14 }
 0x9bd   : > { %2807 = vmatmul.mubr.bf16.vlgmr.msra.gmra.mrb[44].mxu1 %v2116_v15 }
 0xa90   : > { %v2222_v16 = vpop.f32.mrb[44].mxu1 }
 0xa91   : > { %v2223_v17 = vadd.f32 %v2529_v9, %v2222_v16  ;;  %v2808_v18 = vpop.f32.mrb[45].mxu1 }
 0xa92   : > { %v2225_v19 = vpop.f32.mrb[46].mxu1 }
 0xa93   : > { %v2228_v20 = vadd.f32 %v2223_v17, %v4231_v42  ;;  %v2809_v21 = vpop.f32.mrb[47].mxu1 }
 0xa95   : > { %2229 = vst.msk [vmem:[%s657_s1] sm:$0xff] %vm662_vm0, %v2228_v20 }
 0xa96   : > { %3454 = shalt.err (!%p3451_p10)
}
 0xa97   : > { %s3455_s17 = scalar_lea.hbm %s4253_s25, 128  ;;  %s3459_s27 = scalar_lea.hbm %s4361_s0, 256 }
 0xa98   : > { %p3456_p4 = scmp.ne.s32.totalorder %s4253_s25, %s3455_s17  ;;  %p3460_p3 = scmp.lt.u32.totalorder %s4253_s25, %s4361_s0 }
 0xa99   : > { %p3461_p2 = scmp.lt.u32.totalorder %s3459_s27, %s3455_s17  ;;  %p3463_p6 = scmp.lt.u32.totalorder %s3455_s17, %s4253_s25 }
 0xa9a   : > { %p3457_p13 = pnand %p3456_p4, %p4362_p11 }
 0xa9b   : > { %p3462_p0 = por %p3461_p2, %p3460_p3 }
 0xa9c   : > { %p3458_p1 = pneg %p3457_p13 }
 0xa9d   : > { %p3464_p12 = por %p3463_p6, %p3462_p0 }
 0xa9f   : > { %p3465_p8 = pnand %p3464_p12, %p3458_p1 }
 0xaa1   : > { %3468 = shalt.err (!%p3465_p8)
}
 0xaa2   : > { %2864 = dma.vmem_to_hbm [thread:$0]  (%p4362_p11), %s4255_s14, 128, %s4253_s25, %s2231_s21  }
 0xaa3 PF: > { %s4363_s2 = sld [smem:[#allocation35_spill]]  ;;  %p4364_p5 = scmp.ne.s32.totalorder %s4341_s3, 0 }
 0xaa4   : > { %p4365_p9 = scmp.ge.s32.totalorder %s3535_s16, 2 }
 0xaa6   : > { %p2911_p7 = pnand %p4365_p9, %p4364_p5 }
 0xaa9   : > { %s2256_s29 = sand.u32 1, %s4363_s2  }
 0xaaa   : > { %s2257_s18 = scalar_lea.sflag [#allocation4], %s2256_s29 }
 0xaab   : > { %3518 = dma.done.wait (!%p2911_p7), %s2257_s18, 128  }
 0xaac   : > { %3520 = vsyncadd (!%p2911_p7), %s2257_s18, 4294967168  ;;  %p34_p10 = scmp.ge.s32.totalorder %s3952_s23, 4   ;;  %s4366_s29 = smov %s3527_s30 }
 0xaad   : > { %s4367_s30 = smov %s3531_s15  ;;  %s4368_s15 = smov %s3964_s20 }
 0xaae   : > { %s4369_s16 = smov %s3952_s23  ;;  %36 = sbr.rel (!%p34_p10) target bundleno = 18 (0x12), region = 173 }
 0xab5   :  { %2262 = vsyncpa [#allocation3], 1 }
 0xab6   :  { %2264 = vsyncpa [#allocation3 + $0x1], 1 }
 0xab7   :  { %2265 = vsyncpa [#allocation6], 1 }
 0xab8   :  { %2266 = vsyncpa [#allocation9], 1 }
 0xab9   :  { %2267 = vsyncpa [#allocation12], 1 }
 0xaba   :  { %2268 = vsyncpa [#allocation15], 1 }
 0xabb   :  { %2269 = vsyncpa [#allocation18], 1 }
 0xabc   :  { %2270 = vsyncpa [#allocation21], 1 }
 0xabd   :  { %2271 = vsyncpa [#allocation24], 1 }
 0xabe   :  { %2272 = vsyncpa [#allocation4], 1 }
 0xabf   :  { %2274 = vsyncpa [#allocation4 + $0x1], 1 }

</bundles_post_ra>
